<compile_context>
chip_gen: v7x
topology: tpu7x:2x2x1
jax: 0.10.0
libtpu: 0.0.40
codegen_flags: <defaults>
</compile_context>

<pallas_src>
import jax
import jax.numpy as jnp
from jax import lax
from jax.experimental import pallas as pl
from jax.experimental.pallas import tpu as pltpu

HIDDEN = 32          # TGCN2 hidden size (T_GCN2 default hidden_dim=32)
FW = 2 * HIDDEN      # packed conv-gate width: [z | h]  (r-gate is dead when H=None)
TM = 128             # row (target-node) tile
TK = 256             # contraction (source-node) tile — reduction axis, last in grid
TE = 256             # edge tile (lane axis) for the MLP scorer


def _sigmoid(x):
    # exp on EUP + approx reciprocal on EUP: keeps the VALU slot free in the finalize.
    return pl.reciprocal(1.0 + jnp.exp(-x), approx=True)


# -------- kernel 1: fused GCN aggregation + TGCN2 cell (H = 0 specialization) ----------
def fused_gcn_cell_kernel(x_ref, w_ref, dis_k_ref, a_ref, dis_i_ref, bconv_ref,
                          u_ref, bgate_ref, h_ref, acc_ref):
    k = pl.program_id(1)

    @pl.when(k == 0)
    def _():
        acc_ref[...] = jnp.zeros_like(acc_ref)

    # On-the-fly feature transform of the source tile: s_k = D^{-1/2} * (X_k @ [Wz|Wh]).
    s_k = dis_k_ref[...] * jnp.dot(x_ref[...], w_ref[...],
                                   preferred_element_type=jnp.float32)
    # bf16 adjacency holds exact 0/1/2 values; cast in-vreg, accumulate in f32.
    acc_ref[...] += jnp.dot(a_ref[...].astype(jnp.float32), s_k,
                            preferred_element_type=jnp.float32)

    @pl.when(k == pl.num_programs(1) - 1)
    def _():
        # c = [C_z | C_h] = D^{-1/2} (A+I) D^{-1/2} X W + b_conv   (lane-packed, 64 wide)
        c = dis_i_ref[...] * acc_ref[...] + bconv_ref[...]
        # Single MXU pass against the block-diagonal packed gate linears.
        g = jnp.dot(c, u_ref[...], preferred_element_type=jnp.float32) + bgate_ref[...]
        z = _sigmoid(g[:, :HIDDEN])
        h_tilde = jnp.tanh(g[:, HIDDEN:])
        # H = None -> zeros:  h_new = z*H + (1-z)*h_tilde = (1-z)*h_tilde
        h_ref[...] = ((1.0 - z) * h_tilde).astype(h_ref.dtype)


# -------- kernel 2: MLP edge scorer, edges on the lane axis ----------------------------
def mlp_edge_kernel(head_ref, tail_ref, w1_ref, b1_ref, w2_ref, b2_ref, o_ref):
    e = head_ref[...] * tail_ref[...]                                  # [hid, TE]
    h1 = jnp.maximum(
        jnp.dot(w1_ref[...], e, preferred_element_type=jnp.float32) + b1_ref[...], 0.0)
    # Second layer has a single output unit -> VPU multiply + sublane reduction
    # (keeps the output [1, TE] lane-dense and skips a 1-row MXU pass).
    logits = jnp.sum(h1 * w2_ref[...], axis=0, keepdims=True) + b2_ref[...]
    o_ref[...] = _sigmoid(logits).astype(o_ref.dtype)


def t_gcn2_forward(x, edge_index, params):
    """x: [N, F_in] f32, edge_index: [2, E] int32 (row 0 = source, row 1 = target)."""
    n, f_in = x.shape
    n_edges = edge_index.shape[1]
    hid = HIDDEN
    assert n % TM == 0 and n % TK == 0 and n_edges % TE == 0

    src, tgt = edge_index[0], edge_index[1]

    # --- glue: dense A + I in bf16 (exact 0/1/2) and D^{-1/2} from the edge list (O(E)) --
    # TODO(synk): for a static graph hoist a_hat/deg/dis and the weight packing below out
    # of the per-call path; for large sparse graphs replace the dense O(N^2) adjacency
    # with a scalar-prefetch per-row neighbour-list gather (O(E*F) HBM traffic).
    diag = jnp.arange(n)
    a_hat = (jnp.zeros((n, n), jnp.bfloat16)
             .at[tgt, src].add(1.0)
             .at[diag, diag].add(1.0))
    deg = 1.0 + jnp.zeros((n,), jnp.float32).at[tgt].add(1.0)   # rowsum(A + I)
    dis = lax.rsqrt(deg).reshape(n, 1)

    # --- pack z/h conv weights & biases (r-gate is dead: H*R == 0 with H=None) -----------
    w_all = jnp.concatenate([params["w_conv_z"], params["w_conv_h"]], axis=1)  # [f_in,64]
    b_all = jnp.concatenate([params["b_conv_z"], params["b_conv_h"]]).reshape(1, FW)

    # Block-diagonal packed gate linears (only the conv-output half; H half is dead).
    # TODO(synk): general nonzero-H path would add the H-side linears and the r-gate.
    u = jnp.zeros((FW, FW), jnp.float32)
    u = u.at[0 * hid:1 * hid, 0 * hid:1 * hid].set(params["w_lin_z"][:, :hid].T)
    u = u.at[1 * hid:2 * hid, 1 * hid:2 * hid].set(params["w_lin_h"][:, :hid].T)
    b_gate = jnp.concatenate([params["b_lin_z"], params["b_lin_h"]]).reshape(1, FW)

    # --- fused node kernel ----------------------------------------------------------------
    h_new = pl.pallas_call(
        fused_gcn_cell_kernel,
        out_shape=jax.ShapeDtypeStruct((n, hid), jnp.float32),
        grid=(n // TM, n // TK),
        in_specs=[pl.BlockSpec((TK, f_in), lambda i, k: (k, 0)),   # X source tile
                  pl.BlockSpec((f_in, FW), lambda i, k: (0, 0)),   # packed conv weights
                  pl.BlockSpec((TK, 1), lambda i, k: (k, 0)),      # D^{-1/2} (source)
                  pl.BlockSpec((TM, TK), lambda i, k: (i, k)),     # A + I tile (bf16)
                  pl.BlockSpec((TM, 1), lambda i, k: (i, 0)),      # D^{-1/2} (target)
                  pl.BlockSpec((1, FW), lambda i, k: (0, 0)),      # conv bias
                  pl.BlockSpec((FW, FW), lambda i, k: (0, 0)),     # packed gate linears
                  pl.BlockSpec((1, FW), lambda i, k: (0, 0))],     # gate bias
        out_specs=pl.BlockSpec((TM, hid), lambda i, k: (i, 0)),
        scratch_shapes=[pltpu.VMEM((TM, FW), jnp.float32)],
        compiler_params=pltpu.CompilerParams(
            dimension_semantics=("parallel", "arbitrary")),
        cost_estimate=pl.CostEstimate(
            flops=2 * n * n * FW + 2 * (n // TM) * n * f_in * FW + 2 * n * FW * FW,
            transcendentals=2 * n * hid,
            bytes_accessed=(n * n * 2                      # adjacency (bf16)
                            + (n // TM) * n * f_in * 4     # X k-tiles re-read per row tile
                            + n * hid * 4 + 2 * n * 4      # h_new out + dis reads
                            + (f_in + 2 + FW) * FW * 4)),  # small resident operands
    )(x, w_all, dis, a_hat, dis, b_all, u, b_gate)

    # --- glue: edge-endpoint gather, transposed so edges land on the lane axis -----------
    head_t = h_new[src].T          # [hid, E]
    tail_t = h_new[tgt].T          # [hid, E]
    w1 = params["w_h1"]            # [hid, hid] torch layout (out, in) -> used as-is on the left
    b1 = params["b_h1"].reshape(hid, 1)
    w2t = params["w_out"].T        # [hid, 1]
    b2 = params["b_out"].reshape(1, 1)

    probs_t = pl.pallas_call(
        mlp_edge_kernel,
        out_shape=jax.ShapeDtypeStruct((1, n_edges), jnp.float32),
        grid=(n_edges // TE,),
        in_specs=[pl.BlockSpec((hid, TE), lambda i: (0, i)),
                  pl.BlockSpec((hid, TE), lambda i: (0, i)),
                  pl.BlockSpec((hid, hid), lambda i: (0, 0)),
                  pl.BlockSpec((hid, 1), lambda i: (0, 0)),
                  pl.BlockSpec((hid, 1), lambda i: (0, 0)),
                  pl.BlockSpec((1, 1), lambda i: (0, 0))],
        out_specs=pl.BlockSpec((1, TE), lambda i: (0, i)),
        compiler_params=pltpu.CompilerParams(dimension_semantics=("parallel",)),
    )(head_t, tail_t, w1, b1, w2t, b2)

    return probs_t.reshape(n_edges, 1)


def reference_t_gcn2(x, edge_index, p):
    """Pure-JAX f32 dense reference replicating the PyTorch forward (no specialization)."""
    n = x.shape[0]
    hid = HIDDEN
    adj = jnp.zeros((n, n), jnp.float32).at[edge_index[1], edge_index[0]].add(1.0)
    a_hat = adj + jnp.eye(n, dtype=jnp.float32)
    deg = a_hat.sum(axis=1)
    dis = deg ** -0.5
    a_norm = dis[:, None] * a_hat * dis[None, :]

    def gcn(w, b):
        return a_norm @ (x @ w) + b

    cz = gcn(p["w_conv_z"], p["b_conv_z"])
    cr = gcn(p["w_conv_r"], p["b_conv_r"])
    ch = gcn(p["w_conv_h"], p["b_conv_h"])

    h = jnp.zeros((n, hid), jnp.float32)                       # TGCN2: H=None -> zeros
    z = jax.nn.sigmoid(jnp.concatenate([cz, h], -1) @ p["w_lin_z"].T + p["b_lin_z"])
    r = jax.nn.sigmoid(jnp.concatenate([cr, h], -1) @ p["w_lin_r"].T + p["b_lin_r"])
    h_tilde = jnp.tanh(jnp.concatenate([ch, h * r], -1) @ p["w_lin_h"].T + p["b_lin_h"])
    h_new = z * h + (1.0 - z) * h_tilde

    head = h_new[edge_index[0]]
    tail = h_new[edge_index[1]]
    e = head * tail
    h1 = jax.nn.relu(e @ p["w_h1"].T + p["b_h1"])
    logits = h1 @ p["w_out"].T + p["b_out"]
    return jax.nn.sigmoid(logits)


if __name__ == "__main__":
    N, F_IN = 256, 8                       # input_dim=8, hidden_dim=32 (module default)
    key = jax.random.PRNGKey(0)
    ks = jax.random.split(key, 16)

    # Node features.
    x = jax.random.normal(ks[0], (N, F_IN), dtype=jnp.float32)

    # Deterministic undirected ring graph: edges i->i+1 and i+1->i  (E = 2N = 512).
    idx = jnp.arange(N, dtype=jnp.int32)
    nxt = (idx + 1) % N
    edge_index = jnp.stack([jnp.concatenate([idx, nxt]),
                            jnp.concatenate([nxt, idx])], axis=0)

    def glorot(k, shape):
        limit = (6.0 / (shape[0] + shape[1])) ** 0.5
        return jax.random.uniform(k, shape, jnp.float32, -limit, limit)

    params = {
        # GCNConv weights stored [in, out]; small random biases to exercise the path.
        "w_conv_z": glorot(ks[1], (F_IN, HIDDEN)),
        "w_conv_r": glorot(ks[2], (F_IN, HIDDEN)),
        "w_conv_h": glorot(ks[3], (F_IN, HIDDEN)),
        "b_conv_z": 0.1 * jax.random.normal(ks[4], (HIDDEN,), jnp.float32),
        "b_conv_r": 0.1 * jax.random.normal(ks[5], (HIDDEN,), jnp.float32),
        "b_conv_h": 0.1 * jax.random.normal(ks[6], (HIDDEN,), jnp.float32),
        # torch.nn.Linear(2*HIDDEN, HIDDEN) layout: weight [out, in], bias [out].
        "w_lin_z": glorot(ks[7], (HIDDEN, 2 * HIDDEN)),
        "w_lin_r": glorot(ks[8], (HIDDEN, 2 * HIDDEN)),
        "w_lin_h": glorot(ks[9], (HIDDEN, 2 * HIDDEN)),
        "b_lin_z": 0.1 * jax.random.normal(ks[10], (HIDDEN,), jnp.float32),
        "b_lin_r": 0.1 * jax.random.normal(ks[11], (HIDDEN,), jnp.float32),
        "b_lin_h": 0.1 * jax.random.normal(ks[12], (HIDDEN,), jnp.float32),
        # MLP: Linear(32, 32) and Linear(32, 1), xavier-uniform weights (module init).
        "w_h1": glorot(ks[13], (HIDDEN, HIDDEN)),
        "b_h1": 0.1 * jax.random.normal(ks[14], (HIDDEN,), jnp.float32),
        "w_out": glorot(ks[15], (1, HIDDEN)),
        "b_out": jnp.zeros((1,), jnp.float32),
    }

    fwd = jax.jit(t_gcn2_forward)
    probs = jax.block_until_ready(fwd(x, edge_index, params))

    probs_ref = reference_t_gcn2(x, edge_index, params)
    assert probs.shape == (edge_index.shape[1], 1)
    # bf16 adjacency is exact; default-precision MXU + approx reciprocal -> loose tolerance.
    assert jnp.allclose(probs, probs_ref, atol=2e-2, rtol=2e-2), (
        float(jnp.max(jnp.abs(probs - probs_ref))))

    print("KERNEL_OK")
</pallas_src>

<mosaic_0001>
module attributes {stable_mosaic.version = 11 : i64} {
  func.func private @main(%arg0: i32) attributes {dimension_semantics = [#tpu.dimension_semantics<core_parallel>], iteration_bounds = array<i64: 2>, tpu.core_type = #tpu.core_type<sc_scalar_subcore>, window_params = []} {
    return
  }
}

module attributes {stable_mosaic.version = 11 : i64} {
  func.func private @main(%arg0: i32) attributes {dimension_semantics = [#tpu.dimension_semantics<core_parallel>], iteration_bounds = array<i64: 2>, tpu.core_type = #tpu.core_type<sc_scalar_subcore>, window_params = []} {
    return
  }
}

module attributes {stable_mosaic.version = 11 : i64} {
  func.func @fused_gcn_cell_kernel(%arg0: i32, %arg1: i32, %arg2: memref<256x8xf32, #tpu.memory_space<vmem>>, %arg3: memref<8x64xf32, #tpu.memory_space<vmem>>, %arg4: memref<256x1xf32, #tpu.memory_space<vmem>>, %arg5: memref<128x256xbf16, #tpu.memory_space<vmem>>, %arg6: memref<128x1xf32, #tpu.memory_space<vmem>>, %arg7: memref<1x64xf32, #tpu.memory_space<vmem>>, %arg8: memref<64x64xf32, #tpu.memory_space<vmem>>, %arg9: memref<1x64xf32, #tpu.memory_space<vmem>>, %arg10: memref<128x32xf32, #tpu.memory_space<vmem>>, %arg11: memref<128x64xf32, #tpu.memory_space<vmem>>) attributes {dimension_semantics = [#tpu.dimension_semantics<parallel>, #tpu.dimension_semantics<arbitrary>], iteration_bounds = array<i64: 2, 1>, scalar_prefetch = 0 : i64, scratch_operands = 1 : i64, tpu.core_type = #tpu.core_type<tc>, window_params = [{transform_indices = @transform_0, window_bounds = array<i64: 256, 8>}, {pipeline_mode = #tpu.pipeline_mode<synchronous>, transform_indices = @transform_1, window_bounds = array<i64: 8, 64>}, {transform_indices = @transform_2, window_bounds = array<i64: 256, 1>}, {transform_indices = @transform_3, window_bounds = array<i64: 128, 256>}, {transform_indices = @transform_4, window_bounds = array<i64: 128, 1>}, {pipeline_mode = #tpu.pipeline_mode<synchronous>, transform_indices = @transform_5, window_bounds = array<i64: 1, 64>}, {pipeline_mode = #tpu.pipeline_mode<synchronous>, transform_indices = @transform_6, window_bounds = array<i64: 64, 64>}, {pipeline_mode = #tpu.pipeline_mode<synchronous>, transform_indices = @transform_7, window_bounds = array<i64: 1, 64>}, {transform_indices = @transform_8, window_bounds = array<i64: 128, 32>}]} {
    %c0_i32 = arith.constant 0 : i32
    %0 = arith.cmpi eq, %arg1, %c0_i32 : i32
    %1 = arith.extui %0 : i1 to i32
    %c0_i32_0 = arith.constant 0 : i32
    %2 = arith.cmpi ne, %1, %c0_i32_0 : i32
    scf.if %2 {
      %cst_15 = arith.constant 0.000000e+00 : f32
      %18 = vector.broadcast %cst_15 : f32 to vector<128x64xf32>
      %c0_16 = arith.constant 0 : index
      %c0_17 = arith.constant 0 : index
      %19 = vector.load %arg11[%c0_16, %c0_17] : memref<128x64xf32, #tpu.memory_space<vmem>>, vector<128x64xf32>
      tpu.vector_store %arg11[%c0_16, %c0_17], %18 {strides = array<i32>} : memref<128x64xf32, #tpu.memory_space<vmem>>, vector<128x64xf32>,
    } else {
    }
    %c0 = arith.constant 0 : index
    %c0_1 = arith.constant 0 : index
    %3 = vector.load %arg4[%c0, %c0_1] : memref<256x1xf32, #tpu.memory_space<vmem>>, vector<256x1xf32>
    %c0_2 = arith.constant 0 : index
    %c0_3 = arith.constant 0 : index
    %4 = vector.load %arg2[%c0_2, %c0_3] : memref<256x8xf32, #tpu.memory_space<vmem>>, vector<256x8xf32>
    %c0_4 = arith.constant 0 : index
    %c0_5 = arith.constant 0 : index
    %5 = vector.load %arg3[%c0_4, %c0_5] : memref<8x64xf32, #tpu.memory_space<vmem>>, vector<8x64xf32>
    %cst = arith.constant dense<0.000000e+00> : vector<256x64xf32>
    %6 = tpu.matmul %4, %5, %cst {dimension_numbers = #tpu.dot_dimension_numbers<[1], [0], [0], [1], [0, 0, 1, 1], [], []>} : vector<256x8xf32>, vector<8x64xf32>, vector<256x64xf32> -> vector<256x64xf32>
    %7 = vector.broadcast %3 : vector<256x1xf32> to vector<256x64xf32>
    %8 = arith.mulf %7, %6 : vector<256x64xf32>
    %c0_6 = arith.constant 0 : index
    %c0_7 = arith.constant 0 : index
    %9 = vector.load %arg11[%c0_6, %c0_7] : memref<128x64xf32, #tpu.memory_space<vmem>>, vector<128x64xf32>
    %c0_8 = arith.constant 0 : index
    %c0_9 = arith.constant 0 : index
    %10 = vector.load %arg5[%c0_8, %c0_9] : memref<128x256xbf16, #tpu.memory_space<vmem>>, vector<128x256xbf16>
    %11 = arith.extf %10 : vector<128x256xbf16> to vector<128x256xf32>
    %cst_10 = arith.constant dense<0.000000e+00> : vector<128x64xf32>
    %12 = tpu.matmul %11, %8, %cst_10 {dimension_numbers = #tpu.dot_dimension_numbers<[1], [0], [0], [1], [0, 0, 1, 1], [], []>} : vector<128x256xf32>, vector<256x64xf32>, vector<128x64xf32> -> vector<128x64xf32>
    %13 = arith.addf %9, %12 : vector<128x64xf32>
    %c0_11 = arith.constant 0 : index
    %c0_12 = arith.constant 0 : index
    %14 = vector.load %arg11[%c0_11, %c0_12] : memref<128x64xf32, #tpu.memory_space<vmem>>, vector<128x64xf32>
    tpu.vector_store %arg11[%c0_11, %c0_12], %13 {strides = array<i32>} : memref<128x64xf32, #tpu.memory_space<vmem>>, vector<128x64xf32>,
    %c0_i32_13 = arith.constant 0 : i32
    %15 = arith.cmpi eq, %arg1, %c0_i32_13 : i32
    %16 = arith.extui %15 : i1 to i32
    %c0_i32_14 = arith.constant 0 : i32
    %17 = arith.cmpi ne, %16, %c0_i32_14 : i32
    scf.if %17 {
      %c0_15 = arith.constant 0 : index
      %c0_16 = arith.constant 0 : index
      %18 = vector.load %arg6[%c0_15, %c0_16] : memref<128x1xf32, #tpu.memory_space<vmem>>, vector<128x1xf32>
      %c0_17 = arith.constant 0 : index
      %c0_18 = arith.constant 0 : index
      %19 = vector.load %arg11[%c0_17, %c0_18] : memref<128x64xf32, #tpu.memory_space<vmem>>, vector<128x64xf32>
      %20 = vector.broadcast %18 : vector<128x1xf32> to vector<128x64xf32>
      %21 = arith.mulf %20, %19 : vector<128x64xf32>
      %c0_19 = arith.constant 0 : index
      %c0_20 = arith.constant 0 : index
      %22 = vector.load %arg7[%c0_19, %c0_20] : memref<1x64xf32, #tpu.memory_space<vmem>>, vector<1x64xf32>
      %23 = vector.broadcast %22 : vector<1x64xf32> to vector<128x64xf32>
      %24 = arith.addf %21, %23 : vector<128x64xf32>
      %c0_21 = arith.constant 0 : index
      %c0_22 = arith.constant 0 : index
      %25 = vector.load %arg8[%c0_21, %c0_22] : memref<64x64xf32, #tpu.memory_space<vmem>>, vector<64x64xf32>
      %cst_23 = arith.constant dense<0.000000e+00> : vector<128x64xf32>
      %26 = tpu.matmul %24, %25, %cst_23 {dimension_numbers = #tpu.dot_dimension_numbers<[1], [0], [0], [1], [0, 0, 1, 1], [], []>} : vector<128x64xf32>, vector<64x64xf32>, vector<128x64xf32> -> vector<128x64xf32>
      %c0_24 = arith.constant 0 : index
      %c0_25 = arith.constant 0 : index
      %27 = vector.load %arg9[%c0_24, %c0_25] : memref<1x64xf32, #tpu.memory_space<vmem>>, vector<1x64xf32>
      %28 = vector.broadcast %27 : vector<1x64xf32> to vector<128x64xf32>
      %29 = arith.addf %26, %28 : vector<128x64xf32>
      %30 = vector.extract_strided_slice %29 {offsets = [0, 0], sizes = [128, 32], strides = [1, 1]} : vector<128x64xf32> to vector<128x32xf32>
      %cst_26 = arith.constant 0.000000e+00 : f32
      %31 = vector.broadcast %cst_26 : f32 to vector<128x32xf32>
      %32 = arith.subf %31, %30 : vector<128x32xf32>
      %33 = math.exp %32 : vector<128x32xf32>
      %cst_27 = arith.constant 1.000000e+00 : f32
      %34 = vector.broadcast %cst_27 : f32 to vector<128x32xf32>
      %35 = arith.addf %34, %33 : vector<128x32xf32>
      %36 = tpu.reciprocal %35 {approx = true} : vector<128x32xf32> -> vector<128x32xf32>
      %37 = vector.extract_strided_slice %29 {offsets = [0, 32], sizes = [128, 32], strides = [1, 1]} : vector<128x64xf32> to vector<128x32xf32>
      %38 = math.tanh %37 : vector<128x32xf32>
      %cst_28 = arith.constant 1.000000e+00 : f32
      %39 = vector.broadcast %cst_28 : f32 to vector<128x32xf32>
      %40 = arith.subf %39, %36 : vector<128x32xf32>
      %41 = arith.mulf %40, %38 : vector<128x32xf32>
      %c0_29 = arith.constant 0 : index
      %c0_30 = arith.constant 0 : index
      %42 = vector.load %arg10[%c0_29, %c0_30] : memref<128x32xf32, #tpu.memory_space<vmem>>, vector<128x32xf32>
      tpu.vector_store %arg10[%c0_29, %c0_30], %41 {strides = array<i32>} : memref<128x32xf32, #tpu.memory_space<vmem>>, vector<128x32xf32>,
    } else {
    }
    return
  }
  func.func @transform_0(%arg0: i32, %arg1: i32) -> (i32, i32) {
    %c0_i32 = arith.constant 0 : i32
    %c0_i32_0 = arith.constant 0 : i32
    return %arg1, %c0_i32 : i32, i32
  }
  func.func @transform_1(%arg0: i32, %arg1: i32) -> (i32, i32) {
    %c0_i32 = arith.constant 0 : i32
    %c0_i32_0 = arith.constant 0 : i32
    %c0_i32_1 = arith.constant 0 : i32
    return %c0_i32, %c0_i32_0 : i32, i32
  }
  func.func @transform_2(%arg0: i32, %arg1: i32) -> (i32, i32) {
    %c0_i32 = arith.constant 0 : i32
    %c0_i32_0 = arith.constant 0 : i32
    return %arg1, %c0_i32 : i32, i32
  }
  func.func @transform_3(%arg0: i32, %arg1: i32) -> (i32, i32) {
    %c0_i32 = arith.constant 0 : i32
    return %arg0, %arg1 : i32, i32
  }
  func.func @transform_4(%arg0: i32, %arg1: i32) -> (i32, i32) {
    %c0_i32 = arith.constant 0 : i32
    %c0_i32_0 = arith.constant 0 : i32
    return %arg0, %c0_i32 : i32, i32
  }
  func.func @transform_5(%arg0: i32, %arg1: i32) -> (i32, i32) {
    %c0_i32 = arith.constant 0 : i32
    %c0_i32_0 = arith.constant 0 : i32
    %c0_i32_1 = arith.constant 0 : i32
    return %c0_i32, %c0_i32_0 : i32, i32
  }
  func.func @transform_6(%arg0: i32, %arg1: i32) -> (i32, i32) {
    %c0_i32 = arith.constant 0 : i32
    %c0_i32_0 = arith.constant 0 : i32
    %c0_i32_1 = arith.constant 0 : i32
    return %c0_i32, %c0_i32_0 : i32, i32
  }
  func.func @transform_7(%arg0: i32, %arg1: i32) -> (i32, i32) {
    %c0_i32 = arith.constant 0 : i32
    %c0_i32_0 = arith.constant 0 : i32
    %c0_i32_1 = arith.constant 0 : i32
    return %c0_i32, %c0_i32_0 : i32, i32
  }
  func.func @transform_8(%arg0: i32, %arg1: i32) -> (i32, i32) {
    %c0_i32 = arith.constant 0 : i32
    %c0_i32_0 = arith.constant 0 : i32
    return %arg0, %c0_i32 : i32, i32
  }
}

module attributes {stable_mosaic.version = 11 : i64} {
  func.func @mlp_edge_kernel(%arg0: i32, %arg1: memref<32x256xf32, #tpu.memory_space<vmem>>, %arg2: memref<32x256xf32, #tpu.memory_space<vmem>>, %arg3: memref<32x32xf32, #tpu.memory_space<vmem>>, %arg4: memref<32x1xf32, #tpu.memory_space<vmem>>, %arg5: memref<32x1xf32, #tpu.memory_space<vmem>>, %arg6: memref<1x1xf32, #tpu.memory_space<vmem>>, %arg7: memref<1x256xf32, #tpu.memory_space<vmem>>) attributes {dimension_semantics = [#tpu.dimension_semantics<parallel>], iteration_bounds = array<i64: 2>, scalar_prefetch = 0 : i64, scratch_operands = 0 : i64, tpu.core_type = #tpu.core_type<tc>, window_params = [{transform_indices = @transform_0, window_bounds = array<i64: 32, 256>}, {transform_indices = @transform_1, window_bounds = array<i64: 32, 256>}, {pipeline_mode = #tpu.pipeline_mode<synchronous>, transform_indices = @transform_2, window_bounds = array<i64: 32, 32>}, {pipeline_mode = #tpu.pipeline_mode<synchronous>, transform_indices = @transform_3, window_bounds = array<i64: 32, 1>}, {pipeline_mode = #tpu.pipeline_mode<synchronous>, transform_indices = @transform_4, window_bounds = array<i64: 32, 1>}, {pipeline_mode = #tpu.pipeline_mode<synchronous>, transform_indices = @transform_5, window_bounds = array<i64: 1, 1>}, {transform_indices = @transform_6, window_bounds = array<i64: 1, 256>}]} {
    %c0 = arith.constant 0 : index
    %c0_0 = arith.constant 0 : index
    %0 = vector.load %arg1[%c0, %c0_0] : memref<32x256xf32, #tpu.memory_space<vmem>>, vector<32x256xf32>
    %c0_1 = arith.constant 0 : index
    %c0_2 = arith.constant 0 : index
    %1 = vector.load %arg2[%c0_1, %c0_2] : memref<32x256xf32, #tpu.memory_space<vmem>>, vector<32x256xf32>
    %2 = arith.mulf %0, %1 : vector<32x256xf32>
    %c0_3 = arith.constant 0 : index
    %c0_4 = arith.constant 0 : index
    %3 = vector.load %arg3[%c0_3, %c0_4] : memref<32x32xf32, #tpu.memory_space<vmem>>, vector<32x32xf32>
    %cst = arith.constant dense<0.000000e+00> : vector<32x256xf32>
    %4 = tpu.matmul %3, %2, %cst {dimension_numbers = #tpu.dot_dimension_numbers<[1], [0], [0], [1], [0, 0, 1, 1], [], []>} : vector<32x32xf32>, vector<32x256xf32>, vector<32x256xf32> -> vector<32x256xf32>
    %c0_5 = arith.constant 0 : index
    %c0_6 = arith.constant 0 : index
    %5 = vector.load %arg4[%c0_5, %c0_6] : memref<32x1xf32, #tpu.memory_space<vmem>>, vector<32x1xf32>
    %6 = vector.broadcast %5 : vector<32x1xf32> to vector<32x256xf32>
    %7 = arith.addf %4, %6 : vector<32x256xf32>
    %cst_7 = arith.constant 0.000000e+00 : f32
    %8 = vector.broadcast %cst_7 : f32 to vector<32x256xf32>
    %9 = arith.maximumf %7, %8 : vector<32x256xf32>
    %c0_8 = arith.constant 0 : index
    %c0_9 = arith.constant 0 : index
    %10 = vector.load %arg5[%c0_8, %c0_9] : memref<32x1xf32, #tpu.memory_space<vmem>>, vector<32x1xf32>
    %11 = vector.broadcast %10 : vector<32x1xf32> to vector<32x256xf32>
    %12 = arith.mulf %9, %11 : vector<32x256xf32>
    %cst_10 = arith.constant dense<0.000000e+00> : vector<256xf32>
    %13 = vector.multi_reduction <add>, %12, %cst_10 [0] : vector<32x256xf32> to vector<256xf32>
    %14 = vector.shape_cast %13 : vector<256xf32> to vector<1x256xf32>
    %c0_11 = arith.constant 0 : index
    %c0_12 = arith.constant 0 : index
    %15 = vector.load %arg6[%c0_11, %c0_12] : memref<1x1xf32, #tpu.memory_space<vmem>>, vector<1x1xf32>
    %16 = vector.broadcast %15 : vector<1x1xf32> to vector<1x256xf32>
    %17 = arith.addf %14, %16 : vector<1x256xf32>
    %cst_13 = arith.constant 0.000000e+00 : f32
    %18 = vector.broadcast %cst_13 : f32 to vector<1x256xf32>
    %19 = arith.subf %18, %17 : vector<1x256xf32>
    %20 = math.exp %19 : vector<1x256xf32>
    %cst_14 = arith.constant 1.000000e+00 : f32
    %21 = vector.broadcast %cst_14 : f32 to vector<1x256xf32>
    %22 = arith.addf %21, %20 : vector<1x256xf32>
    %23 = tpu.reciprocal %22 {approx = true} : vector<1x256xf32> -> vector<1x256xf32>
    %c0_15 = arith.constant 0 : index
    %c0_16 = arith.constant 0 : index
    %24 = vector.load %arg7[%c0_15, %c0_16] : memref<1x256xf32, #tpu.memory_space<vmem>>, vector<1x256xf32>
    tpu.vector_store %arg7[%c0_15, %c0_16], %23 {strides = array<i32>} : memref<1x256xf32, #tpu.memory_space<vmem>>, vector<1x256xf32>,
    return
  }
  func.func @transform_0(%arg0: i32) -> (i32, i32) {
    %c0_i32 = arith.constant 0 : i32
    %c0_i32_0 = arith.constant 0 : i32
    return %c0_i32, %arg0 : i32, i32
  }
  func.func @transform_1(%arg0: i32) -> (i32, i32) {
    %c0_i32 = arith.constant 0 : i32
    %c0_i32_0 = arith.constant 0 : i32
    return %c0_i32, %arg0 : i32, i32
  }
  func.func @transform_2(%arg0: i32) -> (i32, i32) {
    %c0_i32 = arith.constant 0 : i32
    %c0_i32_0 = arith.constant 0 : i32
    %c0_i32_1 = arith.constant 0 : i32
    return %c0_i32, %c0_i32_0 : i32, i32
  }
  func.func @transform_3(%arg0: i32) -> (i32, i32) {
    %c0_i32 = arith.constant 0 : i32
    %c0_i32_0 = arith.constant 0 : i32
    %c0_i32_1 = arith.constant 0 : i32
    return %c0_i32, %c0_i32_0 : i32, i32
  }
  func.func @transform_4(%arg0: i32) -> (i32, i32) {
    %c0_i32 = arith.constant 0 : i32
    %c0_i32_0 = arith.constant 0 : i32
    %c0_i32_1 = arith.constant 0 : i32
    return %c0_i32, %c0_i32_0 : i32, i32
  }
  func.func @transform_5(%arg0: i32) -> (i32, i32) {
    %c0_i32 = arith.constant 0 : i32
    %c0_i32_0 = arith.constant 0 : i32
    %c0_i32_1 = arith.constant 0 : i32
    return %c0_i32, %c0_i32_0 : i32, i32
  }
  func.func @transform_6(%arg0: i32) -> (i32, i32) {
    %c0_i32 = arith.constant 0 : i32
    %c0_i32_0 = arith.constant 0 : i32
    return %c0_i32, %arg0 : i32, i32
  }
}

</mosaic_0001>

<bundles_post_ra>
// kernel: t_gcn2_forward.2
= control target key start
LH: loop header
LB: loop body
LE: loop exit
PB: predicated region body
PF: predicated region fallthrough
CT: control target
= control target key end

     0   :  { %s2471_s27 = smov 0   ;;  %s2473_s28 = smov 0   ;;  %s3067_s0 = inlined_call_operand.vmem [shape: f32[256,8], index: 0, kind: input, shape index: {}]   ;;  %s3068_s1 = inlined_call_operand.vmem [shape: f32[8,64], index: 1, kind: input, shape index: {}]   ;;  %s3069_s2 = inlined_call_operand.vmem [shape: f32[256,1], index: 2, kind: input, shape index: {}, may-alias: {2,4}]   ;;  %s3070_s3 = inlined_call_operand.vmem [shape: bf16[256,256], index: 3, kind: input, shape index: {}]   ;;  %s3071_s4 = inlined_call_operand.vmem [shape: f32[256,1], index: 4, kind: input, shape index: {}, may-alias: {2,4}]   ;;  %s3072_s5 = inlined_call_operand.vmem [shape: f32[1,64], index: 5, kind: input, shape index: {}]   ;;  %s3073_s6 = inlined_call_operand.vmem [shape: f32[64,64], index: 6, kind: input, shape index: {}]   ;;  %s3074_s7 = inlined_call_operand.vmem [shape: f32[1,64], index: 7, kind: input, shape index: {}]   ;;  %s3075_s8 = inlined_call_operand.vmem [shape: f32[256,32], index: 8, kind: output, shape index: {}]  }
   0x1   :  { %s2475_s29 = smov 0  }
   0x2 LB: > { %s30_s30 = sadd.s32 1, %s2417_s28  ;;  %p1938_p0 = scmp.ge.s32.totalorder %s2421_s29, 1  ;;  %s2421_s29 = sphi %s2475_s29, %s18_s29   ;;  %s2417_s28 = sphi %s2473_s28, %s3077_s28   ;;  %s2413_s27 = sphi %s2471_s27, %s3076_s27  }
   0x3   : > { %p32_p1 = scmp.ge.s32.totalorder %s30_s30, 2  ;;  %p316_p2 = scmp.lt.s32.totalorder %s2421_s29, 3 }
   0x5   : > { %s3079_s30 = smov (%p32_p1, %s30_s30), 0  ;;  %p317_p3 = pnand %p1938_p0, %p316_p2 }
   0x6   : > { %v491_v0 = vld [vmem:[%s3068_s1] sm:$0xff] (!%p317_p3)  ;;  %vm492_vm0 = vcmask (!%p317_p3), 64512   ;;  %v2423_v3 = vmov (!%p317_p3), 0   ;;  %v460_v5 = vld [vmem:[%s3067_s0 + $0x8] sm:$0xff] (!%p317_p3)  ;;  %v461_v6 = vld [vmem:[%s3067_s0 + $0x10] sm:$0xff] (!%p317_p3)  ;;  %s1939_s19 = sshll.u32 (!%p317_p3), %s2413_s27, 4 }
   0x7   : > { %320 = sbr.rel (%p317_p3) target bundleno = 924 (0x39c), region = 52  ;;  %v459_v1 = vld [vmem:[%s3067_s0] sm:$0xff] (!%p317_p3)  ;;  %2302 = vset.pattern.permute.xlu1 (!%p317_p3), %v2423_v3  ;;  %2301 = vset.pattern.permute.xlu0 (!%p317_p3), %v2423_v3  ;;  %v444_v7 = vld [vmem:[%s3069_s2 + $0x88] sm:$0xff] (!%p317_p3)  ;;  %v462_v9 = vld [vmem:[%s3067_s0 + $0x18] sm:$0xff] (!%p317_p3)  ;;  %p384_p4 = scmp.lt.s32.totalorder (!%p317_p3), %s1939_s19, 31  ;;  %vm410_vm1 = vcmask (!%p317_p3), 523264  }
   0x8   : > { %v443_v2 = vld [vmem:[%s3069_s2 + $0x80] sm:$0xff] (!%p317_p3)  ;;  %2136 = vmatprep.subr.mxu0 (!%p317_p3), %v491_v0  ;;  %2138 = vmatprep.mubr.msk.f32.mxu0 (!%p317_p3), %vm492_vm0, %v459_v1  ;;  %v428_v8 = vld [vmem:[%s3069_s2 + $0x8] sm:$0xff] (!%p317_p3)  ;;  %v445_v11 = vld [vmem:[%s3069_s2 + $0x90] sm:$0xff] (!%p317_p3)  ;;  %s2425_s22 = smov (!%p317_p3), 96   ;;  %vm1802_vm2 = vcmask (!%p317_p3), 261120  }
   0x9   : > { %v427_v4 = vld [vmem:[%s3069_s2] sm:$0xff] (!%p317_p3)  ;;  %2137 = vmatpush3.msra.mxu0 (!%p317_p3), %v491_v0  ;;  %896 = vperm.xlu0 (!%p317_p3), %2301, %v443_v2   ;;  %v446_v12 = vld [vmem:[%s3069_s2 + $0x98] sm:$0xff] (!%p317_p3)  ;;  %v464_v13 = vld [vmem:[%s3067_s0 + $0x28] sm:$0xff] (!%p317_p3) }
   0xa   : > { %816 = vperm.xlu1 (!%p317_p3), %2302, %v427_v4   ;;  %2139 = vmatmul.mubr.msk.f32.vlgmr.msra.gmra.mrb[0].mxu0 (!%p317_p3), %vm492_vm0, %v460_v5  ;;  %v463_v10 = vld [vmem:[%s3067_s0 + $0x20] sm:$0xff] (!%p317_p3)  ;;  %v465_v14 = vld [vmem:[%s3067_s0 + $0x30] sm:$0xff] (!%p317_p3)  ;;  %v430_v16 = vld [vmem:[%s3069_s2 + $0x18] sm:$0xff] (!%p317_p3) }
   0xb   : > { %2141 = vmatprep.mubr.msk.f32.mxu0 (!%p317_p3), %vm492_vm0, %v461_v6  ;;  %v429_v15 = vld [vmem:[%s3069_s2 + $0x10] sm:$0xff] (!%p317_p3)  ;;  %v466_v17 = vld [vmem:[%s3067_s0 + $0x38] sm:$0xff] (!%p317_p3)  ;;  %v467_v18 = vld [vmem:[%s3067_s0 + $0x40] sm:$0xff] (!%p317_p3) }
   0xc   : > { %v447_v19 = vld [vmem:[%s3069_s2 + $0xa0] sm:$0xff] (!%p317_p3)  ;;  %v448_v20 = vld [vmem:[%s3069_s2 + $0xa8] sm:$0xff] (!%p317_p3)  ;;  %v469_v22 = vld [vmem:[%s3067_s0 + $0x50] sm:$0xff] (!%p317_p3) }
   0xd   : > { %901 = vperm.xlu0 (!%p317_p3), %2301, %v444_v7   ;;  %v468_v21 = vld [vmem:[%s3067_s0 + $0x48] sm:$0xff] (!%p317_p3)  ;;  %v431_v23 = vld [vmem:[%s3069_s2 + $0x20] sm:$0xff] (!%p317_p3)  ;;  %v470_v25 = vld [vmem:[%s3067_s0 + $0x58] sm:$0xff] (!%p317_p3) }
   0xe   : > { %821 = vperm.xlu1 %2302, %v428_v8   ;;  %2142 = vmatmul.mubr.msk.f32.gmra.mrb[2].mxu0 %vm492_vm0, %v462_v9  ;;  %v432_v24 = vld [vmem:[%s3069_s2 + $0x28] sm:$0xff]  ;;  %v471_v26 = vld [vmem:[%s3067_s0 + $0x60] sm:$0xff]  ;;  %v449_v27 = vld [vmem:[%s3069_s2 + $0xb0] sm:$0xff]  ;;  %s3081_s19 = smov (!%p384_p4, %s1939_s19), 31 }
   0xf   : > { %2144 = vmatprep.mubr.msk.f32.mxu0 %vm492_vm0, %v463_v10  ;;  %v450_v28 = vld [vmem:[%s3069_s2 + $0xb8] sm:$0xff]  ;;  %v472_v29 = vld [vmem:[%s3067_s0 + $0x68] sm:$0xff]  ;;  %v473_v30 = vld [vmem:[%s3067_s0 + $0x70] sm:$0xff]  ;;  %s2707_s26 = sshll.u32 %s3081_s19, 3 }
  0x10   : > { %v433_v31 = vld [vmem:[%s3069_s2 + $0x30] sm:$0xff]  ;;  %v434_v32 = vld [vmem:[%s3069_s2 + $0x38] sm:$0xff]  ;;  %v475_v34 = vld [vmem:[%s3067_s0 + $0x80] sm:$0xff]  ;;  %s2724_s15 = scalar_lea.vmem %s3071_s4, %s2707_s26  ;;  %s2747_s18 = scalar_lea.vmem %s3070_s3, %s2707_s26 }
  0x11   : > { %906 = vperm.xlu0 %2301, %v445_v11   ;;  %v474_v33 = vld [vmem:[%s3067_s0 + $0x78] sm:$0xff]  ;;  %v451_v35 = vld [vmem:[%s3069_s2 + $0xc0] sm:$0xff]  ;;  %v452_v36 = vld [vmem:[%s3069_s2 + $0xc8] sm:$0xff]  ;;  %s3019_s25 = scalar_lea.vmem %s3075_s8, %s2707_s26 }
  0x12   : > { %911 = vperm.xlu1 %2302, %v446_v12   ;;  %2145 = vmatmul.mubr.msk.f32.gmra.mrb[4].mxu0 %vm492_vm0, %v464_v13  ;;  %v476_v37 = vld [vmem:[%s3067_s0 + $0x88] sm:$0xff]  ;;  %v477_v38 = vld [vmem:[%s3067_s0 + $0x90] sm:$0xff]  ;;  %v435_v39 = vld [vmem:[%s3069_s2 + $0x40] sm:$0xff] }
  0x13   : > { %2147 = vmatprep.mubr.msk.f32.mxu0 %vm492_vm0, %v465_v14  ;;  %v436_v40 = vld [vmem:[%s3069_s2 + $0x48] sm:$0xff]  ;;  %v478_v41 = vld [vmem:[%s3067_s0 + $0x98] sm:$0xff]  ;;  %v479_v42 = vld [vmem:[%s3067_s0 + $0xa0] sm:$0xff] }
  0x14   : > { %v453_v43 = vld [vmem:[%s3069_s2 + $0xd0] sm:$0xff]  ;;  %v454_v44 = vld [vmem:[%s3069_s2 + $0xd8] sm:$0xff]  ;;  %v480_v45 = vld [vmem:[%s3067_s0 + $0xa8] sm:$0xff] }
  0x15   : > { %826 = vperm.xlu0 %2301, %v429_v15   ;;  %v481_v46 = vld [vmem:[%s3067_s0 + $0xb0] sm:$0xff]  ;;  %v438_v48 = vld [vmem:[%s3069_s2 + $0x58] sm:$0xff]  ;;  %v483_v50 = vld [vmem:[%s3067_s0 + $0xc0] sm:$0xff] }
  0x16   : > { %831 = vperm.xlu1 %2302, %v430_v16   ;;  %2148 = vmatmul.mubr.msk.f32.gmra.mrb[6].mxu0 %vm492_vm0, %v466_v17  ;;  %v437_v47 = vld [vmem:[%s3069_s2 + $0x50] sm:$0xff]  ;;  %v482_v49 = vld [vmem:[%s3067_s0 + $0xb8] sm:$0xff]  ;;  %v455_v51 = vld [vmem:[%s3069_s2 + $0xe0] sm:$0xff] }
  0x17   : > { %2150 = vmatprep.mubr.msk.f32.mxu0 %vm492_vm0, %v467_v18  ;;  %v456_v52 = vld [vmem:[%s3069_s2 + $0xe8] sm:$0xff]  ;;  %v485_v54 = vld [vmem:[%s3067_s0 + $0xd0] sm:$0xff]  ;;  %v439_v55 = vld [vmem:[%s3069_s2 + $0x60] sm:$0xff] }
  0x18   : > { %v484_v53 = vld [vmem:[%s3067_s0 + $0xc8] sm:$0xff]  ;;  %v486_v57 = vld [vmem:[%s3067_s0 + $0xd8] sm:$0xff]  ;;  %v487_v58 = vld [vmem:[%s3067_s0 + $0xe0] sm:$0xff] }
  0x19   : > { %916 = vperm.xlu0 %2301, %v447_v19   ;;  %v440_v56 = vld [vmem:[%s3069_s2 + $0x68] sm:$0xff]  ;;  %v457_v59 = vld [vmem:[%s3069_s2 + $0xf0] sm:$0xff]  ;;  %v458_v60 = vld [vmem:[%s3069_s2 + $0xf8] sm:$0xff] }
  0x1a   : > { %921 = vperm.xlu1 %2302, %v448_v20   ;;  %2151 = vmatmul.mubr.msk.f32.gmra.mrb[8].mxu0 %vm492_vm0, %v468_v21  ;;  %v488_v61 = vld [vmem:[%s3067_s0 + $0xe8] sm:$0xff]  ;;  %v489_v62 = vld [vmem:[%s3067_s0 + $0xf0] sm:$0xff]  ;;  %v442_v0 = vld [vmem:[%s3069_s2 + $0x78] sm:$0xff] }
  0x1b   : > { %2153 = vmatprep.mubr.msk.f32.mxu0 %vm492_vm0, %v469_v22  ;;  %v441_v63 = vld [vmem:[%s3069_s2 + $0x70] sm:$0xff]  ;;  %v490_v1 = vld [vmem:[%s3067_s0 + $0xf8] sm:$0xff]  ;;  %v1251_v2 = vld [vmem:[%s2724_s15] sm:$0xff] }
  0x1c   : > { %v1252_v3 = vld [vmem:[%s2724_s15 + $0x8] sm:$0xff]  ;;  %v1253_v4 = vld [vmem:[%s2724_s15 + $0x10] sm:$0xff]  ;;  %v1254_v5 = vld [vmem:[%s2724_s15 + $0x18] sm:$0xff] }
  0x1d   : > { %836 = vperm.xlu0 %2301, %v431_v23   ;;  %v1255_v6 = vld [vmem:[%s2724_s15 + $0x20] sm:$0xff]  ;;  %v1256_v7 = vld [vmem:[%s2724_s15 + $0x28] sm:$0xff]  ;;  %v1257_v8 = vld [vmem:[%s2724_s15 + $0x30] sm:$0xff] }
  0x1e   : > { %841 = vperm.xlu1 %2302, %v432_v24   ;;  %2154 = vmatmul.mubr.msk.f32.gmra.mrb[10].mxu0 %vm492_vm0, %v470_v25  ;;  %v1258_v9 = vld [vmem:[%s2724_s15 + $0x38] sm:$0xff]  ;;  %v1259_v10 = vld [vmem:[%s2724_s15 + $0x40] sm:$0xff]  ;;  %v1260_v11 = vld [vmem:[%s2724_s15 + $0x48] sm:$0xff] }
  0x1f   : > { %2156 = vmatprep.mubr.msk.f32.mxu0 %vm492_vm0, %v471_v26  ;;  %v1261_v12 = vld [vmem:[%s2724_s15 + $0x50] sm:$0xff]  ;;  %v1262_v13 = vld [vmem:[%s2724_s15 + $0x58] sm:$0xff]  ;;  %v1263_v14 = vld [vmem:[%s2724_s15 + $0x60] sm:$0xff] }
  0x20   : > { %v1264_v15 = vld [vmem:[%s2724_s15 + $0x68] sm:$0xff]  ;;  %v1265_v16 = vld [vmem:[%s2724_s15 + $0x70] sm:$0xff]  ;;  %v1266_v17 = vld [vmem:[%s2724_s15 + $0x78] sm:$0xff] }
  0x21   : > { %926 = vperm.xlu0 %2301, %v449_v27   ;;  %v2752_v20 = vld [vmem:[%s2747_s18] sm:$0xff] }
  0x22   : > { %931 = vperm.xlu1 %2302, %v450_v28   ;;  %2157 = vmatmul.mubr.msk.f32.gmra.mrb[12].mxu0 %vm492_vm0, %v472_v29  ;;  %v1039_v21 = vunpack.c.h.bf16 %v2752_v20 }
  0x23   : > { %2159 = vmatprep.mubr.msk.f32.mxu0 %vm492_vm0, %v473_v30 }
  0x24   : > { %1134 = vmatprep.mubr.f32.mxu1 %v1039_v21 }
  0x25   : > { %846 = vperm.xlu0 %2301, %v433_v31  }
  0x26   : > { %851 = vperm.xlu1 %2302, %v434_v32   ;;  %2160 = vmatmul.mubr.msk.f32.gmra.mrb[14].mxu0 %vm492_vm0, %v474_v33 }
  0x27   : > { %2162 = vmatprep.mubr.msk.f32.mxu0 %vm492_vm0, %v475_v34 }
  0x29   : > { %936 = vperm.xlu0 %2301, %v451_v35  }
  0x2a   : > { %941 = vperm.xlu1 %2302, %v452_v36   ;;  %2163 = vmatmul.mubr.msk.f32.gmra.mrb[16].mxu0 %vm492_vm0, %v476_v37 }
  0x2b   : > { %2165 = vmatprep.mubr.msk.f32.mxu0 %vm492_vm0, %v477_v38 }
  0x2d   : > { %856 = vperm.xlu0 %2301, %v435_v39  }
  0x2e   : > { %861 = vperm.xlu1 %2302, %v436_v40   ;;  %2166 = vmatmul.mubr.msk.f32.gmra.mrb[18].mxu0 %vm492_vm0, %v478_v41 }
  0x2f   : > { %2168 = vmatprep.mubr.msk.f32.mxu0 %vm492_vm0, %v479_v42 }
  0x31   : > { %946 = vperm.xlu0 %2301, %v453_v43  }
  0x32   : > { %951 = vperm.xlu1 %2302, %v454_v44   ;;  %2169 = vmatmul.mubr.msk.f32.gmra.mrb[20].mxu0 %vm492_vm0, %v480_v45 }
  0x33   : > { %2171 = vmatprep.mubr.msk.f32.mxu0 %vm492_vm0, %v481_v46  ;;  %v1402_v46 = vld [vmem:[%s3073_s6] sm:$0xff] }
  0x35   : > { %866 = vperm.xlu0 %2301, %v437_v47   ;;  %v1403_v47 = vld [vmem:[%s3073_s6 + $0x8] sm:$0xff] }
  0x36   : > { %871 = vperm.xlu1 %2302, %v438_v48   ;;  %2172 = vmatmul.mubr.msk.f32.gmra.mrb[22].mxu0 %vm492_vm0, %v482_v49  ;;  %v2258_v48 = vpack.c.bf16 %v1403_v47, %v1402_v46 }
  0x37   : > { %2174 = vmatprep.mubr.msk.f32.mxu0 %vm492_vm0, %v483_v50 }
  0x38   : > { %2259 = vmatprep.subr.bf16.mxu0 %v2258_v48 }
  0x39   : > { %956 = vperm.xlu0 %2301, %v455_v51   ;;  %2261 = vmatpush3.bf16.msra.mxu0 %v2258_v48 }
  0x3a   : > { %961 = vperm.xlu1 %2302, %v456_v52   ;;  %2175 = vmatmul.mubr.msk.f32.gmra.mrb[24].mxu0 %vm492_vm0, %v484_v53 }
  0x3b   : > { %2177 = vmatprep.mubr.msk.f32.mxu0 %vm492_vm0, %v485_v54 }
  0x3d   : > { %876 = vperm.xlu0 %2301, %v439_v55  }
  0x3e   : > { %881 = vperm.xlu1 %2302, %v440_v56   ;;  %2178 = vmatmul.mubr.msk.f32.gmra.mrb[26].mxu0 %vm492_vm0, %v486_v57 }
  0x3f   : > { %2180 = vmatprep.mubr.msk.f32.mxu0 %vm492_vm0, %v487_v58 }
  0x41   : > { %966 = vperm.xlu0 %2301, %v457_v59  }
  0x42   : > { %971 = vperm.xlu1 %2302, %v458_v60   ;;  %2181 = vmatmul.mubr.msk.f32.gmra.mrb[28].mxu0 %vm492_vm0, %v488_v61 }
  0x43   : > { %2183 = vmatprep.mubr.msk.f32.mxu0 %vm492_vm0, %v489_v62 }
  0x45   : > { %886 = vperm.xlu0 %2301, %v441_v63  }
  0x46   : > { %891 = vperm.xlu1 %2302, %v442_v0   ;;  %2184 = vmatmul.mubr.msk.f32.gmra.mrb[30].mxu0 %vm492_vm0, %v490_v1 }
  0x49   : > { %1285 = vperm.xlu0 %2301, %v1251_v2  }
  0x4a   : > { %1290 = vperm.xlu1 %2302, %v1252_v3  }
  0x4d   : > { %1295 = vperm.xlu0 %2301, %v1253_v4  }
  0x4e   : > { %1300 = vperm.xlu1 %2302, %v1254_v5  }
  0x51   : > { %1305 = vperm.xlu0 %2301, %v1255_v6  }
  0x52   : > { %1310 = vperm.xlu1 %2302, %v1256_v7  }
  0x55   : > { %1315 = vperm.xlu0 %2301, %v1257_v8  }
  0x56   : > { %1320 = vperm.xlu1 %2302, %v1258_v9  }
  0x59   : > { %1325 = vperm.xlu0 %2301, %v1259_v10  }
  0x5a   : > { %1330 = vperm.xlu1 %2302, %v1260_v11  }
  0x5d   : > { %1335 = vperm.xlu0 %2301, %v1261_v12  }
  0x5e   : > { %1340 = vperm.xlu1 %2302, %v1262_v13  }
  0x61   : > { %1345 = vperm.xlu0 %2301, %v1263_v14  }
  0x62   : > { %1350 = vperm.xlu1 %2302, %v1264_v15  }
  0x65   : > { %1355 = vperm.xlu0 %2301, %v1265_v16  }
  0x66   : > { %1360 = vperm.xlu1 %2302, %v1266_v17  }
  0x88   : > { %v2749_v19 = vpop.permute.xlu0 %896 }
  0x89   : > { %v817_v18 = vpop.permute.xlu1 %816 }
  0x8c   : > { %v2755_v23 = vpop.permute.xlu0 %901 }
  0x8d   : > { %v822_v22 = vpop.permute.xlu1 %821 }
  0x90   : > { %v2759_v25 = vpop.permute.xlu0 %906 }
  0x91   : > { %v2757_v24 = vpop.permute.xlu1 %911 }
  0x94   : > { %v827_v27 = vpop.permute.xlu0 %826 }
  0x95   : > { %v832_v26 = vpop.permute.xlu1 %831 }
  0x98   : > { %v2763_v29 = vpop.permute.xlu0 %916 }
  0x99   : > { %v2761_v28 = vpop.permute.xlu1 %921 }
  0x9c   : > { %v837_v31 = vpop.permute.xlu0 %836 }
  0x9d   : > { %v842_v30 = vpop.permute.xlu1 %841 }
  0xa0   : > { %v2767_v33 = vpop.permute.xlu0 %926 }
  0xa1   : > { %v2765_v32 = vpop.permute.xlu1 %931 }
  0xa4   : > { %v847_v35 = vpop.permute.xlu0 %846 }
  0xa5   : > { %v852_v34 = vpop.permute.xlu1 %851 }
  0xa8   : > { %v2771_v37 = vpop.permute.xlu0 %936 }
  0xa9   : > { %v2769_v36 = vpop.permute.xlu1 %941 }
  0xac   : > { %v857_v39 = vpop.permute.xlu0 %856 }
  0xad   : > { %v862_v38 = vpop.permute.xlu1 %861 }
  0xb0   : > { %v2775_v41 = vpop.permute.xlu0 %946 }
  0xb1   : > { %v2773_v40 = vpop.permute.xlu1 %951 }
  0xb4   : > { %v867_v52 = vpop.permute.xlu0 %866 }
  0xb5   : > { %v872_v49 = vpop.permute.xlu1 %871 }
  0xb8   : > { %v2788_v62 = vpop.permute.xlu0 %956 }
  0xb9   : > { %v2786_v60 = vpop.permute.xlu1 %961 }
  0xbc   : > { %v877_v7 = vpop.permute.xlu0 %876 }
  0xbd   : > { %v882_v4 = vpop.permute.xlu1 %881 }
  0xc0   : > { %v2794_v17 = vpop.permute.xlu0 %966 }
  0xc1   : > { %v2792_v15 = vpop.permute.xlu1 %971 }
  0xdd   : > { %v2140_v42 = vpop.f32.mrb[0].mxu0 }
  0xde   : > { %v2777_v43 = vmul.f32 %v2140_v42, %v822_v22  ;;  %v655_v44 = vpop.f32.mrb[1].mxu0 }
  0xdf   : > { %v974_v45 = vmul.f32 %v817_v18, %v655_v44 }
  0xe1   : > { %v2143_v50 = vpop.f32.mrb[2].mxu0  ;;  %v2228_v51 = vpack.c.bf16 %v2777_v43, %v974_v45 }
  0xe2   : > { %v977_v53 = vmul.f32 %v2143_v50, %v832_v26  ;;  %v665_v54 = vpop.f32.mrb[3].mxu0 }
  0xe3   : > { %v976_v55 = vmul.f32 %v827_v27, %v665_v54 }
  0xe5   : > { %v2232_v56 = vpack.c.bf16 %v977_v53, %v976_v55  ;;  %v2146_v57 = vpop.f32.mrb[4].mxu0 }
  0xe6   : > { %v979_v58 = vmul.f32 %v2146_v57, %v842_v30  ;;  %v675_v59 = vpop.f32.mrb[5].mxu0  ;;  %v892_v30 = vpop.permute.xlu1 %891 }
  0xe7   : > { %v978_v61 = vmul.f32 %v837_v31, %v675_v59 }
  0xe9   : > { %v2236_v63 = vpack.c.bf16 %v979_v58, %v978_v61  ;;  %v2149_v0 = vpop.f32.mrb[6].mxu0 }
  0xea   : > { %v981_v1 = vmul.f32 %v2149_v0, %v852_v34  ;;  %v685_v2 = vpop.f32.mrb[7].mxu0 }
  0xeb   : > { %v980_v3 = vmul.f32 %v847_v35, %v685_v2  ;;  %v887_v35 = vpop.permute.xlu0 %886 }
  0xed   : > { %v2240_v5 = vpack.c.bf16 %v981_v1, %v980_v3  ;;  %v2152_v6 = vpop.f32.mrb[8].mxu0 }
  0xee   : > { %v983_v8 = vmul.f32 %v2152_v6, %v862_v38  ;;  %v695_v9 = vpop.f32.mrb[9].mxu0 }
  0xef   : > { %v982_v10 = vmul.f32 %v857_v39, %v695_v9 }
  0xf1   : > { %v2244_v11 = vpack.c.bf16 %v983_v8, %v982_v10  ;;  %v2155_v12 = vpop.f32.mrb[10].mxu0  ;;  %v1023_v10 = vld [vmem:[%s2747_s18 + $0x8] sm:$0xff] }
  0xf2   : > { %v2790_v13 = vmul.f32 %v2155_v12, %v872_v49  ;;  %v705_v14 = vpop.f32.mrb[11].mxu0  ;;  %v1040_v12 = vunpack.c.l.bf16 %v1023_v10 }
  0xf3   : > { %v984_v16 = vmul.f32 %v867_v52, %v705_v14  ;;  %v1025_v14 = vld [vmem:[%s2747_s18 + $0x18] sm:$0xff] }
  0xf5   : > { %v2248_v18 = vpack.c.bf16 %v2790_v13, %v984_v16  ;;  %v2158_v21 = vpop.f32.mrb[12].mxu0  ;;  %v1045_v16 = vunpack.c.h.bf16 %v1025_v14 }
  0xf6   : > { %v2797_v22 = vmul.f32 %v2158_v21, %v882_v4  ;;  %v715_v26 = vpop.f32.mrb[13].mxu0  ;;  %v1027_v21 = vld [vmem:[%s2747_s18 + $0x28] sm:$0xff] }
  0xf7   : > { %v986_v27 = vmul.f32 %v877_v7, %v715_v26  ;;  %v1049_v26 = vunpack.c.h.bf16 %v1027_v21 }
  0xf9   : > { %v2252_v31 = vpack.c.bf16 %v2797_v22, %v986_v27  ;;  %v2161_v34 = vpop.f32.mrb[14].mxu0  ;;  %v1028_v27 = vld [vmem:[%s2747_s18 + $0x30] sm:$0xff] }
  0xfa   : > { %v989_v38 = vmul.f32 %v2161_v34, %v892_v30  ;;  %v725_v39 = vpop.f32.mrb[15].mxu0  ;;  %v1048_v30 = vunpack.c.l.bf16 %v1027_v21  ;;  %v1029_v34 = vld [vmem:[%s2747_s18 + $0x38] sm:$0xff]  ;;  %v2871_v21 = vld [vmem:[%s3072_s5] ss:$0 sm:$0xff] }
  0xfb   : > { %v988_v42 = vmul.f32 %v887_v35, %v725_v39  ;;  %v1050_v35 = vunpack.c.l.bf16 %v1028_v27  ;;  %v1030_v39 = vld [vmem:[%s2747_s18 + $0x40] sm:$0xff] }
  0xfd   : > { %v2256_v43 = vpack.c.bf16 %v989_v38, %v988_v42  ;;  %v2164_v44 = vpop.f32.mrb[16].mxu0  ;;  %v1053_v38 = vunpack.c.h.bf16 %v1029_v34  ;;  %v1052_v42 = vunpack.c.l.bf16 %v1029_v34  ;;  %v1291_v34 = vpop.permute.xlu1 %1290 }
  0xfe   : > { %v991_v45 = vmul.f32 %v2164_v44, %v2755_v23  ;;  %v735_v46 = vpop.f32.mrb[17].mxu0  ;;  %v1031_v44 = vld [vmem:[%s2747_s18 + $0x48] sm:$0xff] }
  0xff   : > { %v990_v47 = vmul.f32 %v2749_v19, %v735_v46  ;;  %v1057_v46 = vunpack.c.h.bf16 %v1031_v44 }
 0x101   : > { %v2167_v48 = vpop.f32.mrb[18].mxu0  ;;  %v2226_v49 = vpack.c.bf16 %v991_v45, %v990_v47  ;;  %v1054_v45 = vunpack.c.l.bf16 %v1030_v39  ;;  %v1032_v47 = vld [vmem:[%s2747_s18 + $0x50] sm:$0xff] }
 0x102   : > { %v993_v50 = vmul.f32 %v2167_v48, %v2757_v24  ;;  %v745_v52 = vpop.f32.mrb[19].mxu0  ;;  %v1056_v48 = vunpack.c.l.bf16 %v1031_v44 }
 0x103   : > { %v992_v53 = vmul.f32 %v2759_v25, %v745_v52  ;;  %2227 = vmatprep.subr.bf16.mxu1 %v2226_v49  ;;  %v1059_v49 = vunpack.c.h.bf16 %v1032_v47  ;;  %v1058_v52 = vunpack.c.l.bf16 %v1032_v47 }
 0x104   : > { %2229 = vmatpush3.bf16.msra.mxu1 %v2228_v51 }
 0x105   : > { %v2230_v54 = vpack.c.bf16 %v993_v50, %v992_v53  ;;  %v2170_v55 = vpop.f32.mrb[20].mxu0  ;;  %v1033_v50 = vld [vmem:[%s2747_s18 + $0x58] sm:$0xff] }
 0x106   : > { %v995_v57 = vmul.f32 %v2170_v55, %v2761_v28  ;;  %v755_v58 = vpop.f32.mrb[21].mxu0  ;;  %v1061_v53 = vunpack.c.h.bf16 %v1033_v50  ;;  %v1060_v55 = vunpack.c.l.bf16 %v1033_v50 }
 0x107   : > { %v994_v59 = vmul.f32 %v2763_v29, %v755_v58  ;;  %2231 = vmatprep.subr.bf16.mxu1 %v2230_v54  ;;  %v1034_v54 = vld [vmem:[%s2747_s18 + $0x60] sm:$0xff]  ;;  %v1035_v58 = vld [vmem:[%s2747_s18 + $0x68] sm:$0xff] }
 0x108   : > { %2233 = vmatpush3.bf16.msra.mxu1 %v2232_v56 }
 0x109   : > { %v2234_v23 = vpack.c.bf16 %v995_v57, %v994_v59  ;;  %v2173_v19 = vpop.f32.mrb[22].mxu0  ;;  %v1063_v57 = vunpack.c.h.bf16 %v1034_v54  ;;  %v1062_v59 = vunpack.c.l.bf16 %v1034_v54 }
 0x10a   : > { %v997_v61 = vmul.f32 %v2173_v19, %v2765_v32  ;;  %v765_v0 = vpop.f32.mrb[23].mxu0  ;;  %v1036_v19 = vld [vmem:[%s2747_s18 + $0x70] sm:$0xff] }
 0x10b   : > { %v996_v24 = vmul.f32 %v2767_v33, %v765_v0  ;;  %2235 = vmatprep.subr.bf16.mxu1 %v2234_v23  ;;  %v1065_v23 = vunpack.c.h.bf16 %v1035_v58  ;;  %v1067_v0 = vunpack.c.h.bf16 %v1036_v19 }
 0x10c   : > { %2237 = vmatpush3.bf16.msra.mxu1 %v2236_v63 }
 0x10d   : > { %v2238_v25 = vpack.c.bf16 %v997_v61, %v996_v24  ;;  %v2176_v51 = vpop.f32.mrb[24].mxu0  ;;  %v1064_v61 = vunpack.c.l.bf16 %v1035_v58  ;;  %v1037_v24 = vld [vmem:[%s2747_s18 + $0x78] sm:$0xff]  ;;  %v1301_v58 = vpop.permute.xlu1 %1300 }
 0x10e   : > { %v999_v1 = vmul.f32 %v2176_v51, %v2769_v36  ;;  %v775_v2 = vpop.f32.mrb[25].mxu0  ;;  %v1069_v51 = vunpack.c.h.bf16 %v1037_v24 }
 0x10f   : > { %v998_v28 = vmul.f32 %v2771_v37, %v775_v2  ;;  %2239 = vmatprep.subr.bf16.mxu1 %v2238_v25  ;;  %v1066_v25 = vunpack.c.l.bf16 %v1036_v19  ;;  %v2424_v2 = vmov 0.0  }
 0x110   : > { %2241 = vmatpush3.bf16.msra.mxu1 %v2240_v5  ;;  %411 = vst.msk [vmem:[#allocation2] sm:$0xff] %vm410_vm1, %v2424_v2  ;;  %412 = vst.msk [vmem:[#allocation2 + $0x8] sm:$0xff] %vm410_vm1, %v2424_v2 }
 0x111   : > { %v2242_v29 = vpack.c.bf16 %v999_v1, %v998_v28  ;;  %v2179_v56 = vpop.f32.mrb[26].mxu0  ;;  %v1068_v1 = vunpack.c.l.bf16 %v1037_v24  ;;  %413 = vst.msk [vmem:[#allocation2 + $0x10] sm:$0xff] %vm410_vm1, %v2424_v2  ;;  %414 = vst.msk [vmem:[#allocation2 + $0x18] sm:$0xff] %vm410_vm1, %v2424_v2  ;;  %v1404_v28 = vld [vmem:[%s3073_s6 + $0x10] sm:$0xff] }
 0x112   : > { %v1001_v3 = vmul.f32 %v2179_v56, %v2773_v40  ;;  %v785_v4 = vpop.f32.mrb[27].mxu0  ;;  %415 = vst.msk [vmem:[#allocation2 + $0x20] sm:$0xff] %vm410_vm1, %v2424_v2  ;;  %416 = vst.msk [vmem:[#allocation2 + $0x28] sm:$0xff] %vm410_vm1, %v2424_v2 }
 0x113   : > { %v1000_v32 = vmul.f32 %v2775_v41, %v785_v4  ;;  %2243 = vmatprep.subr.bf16.mxu1 %v2242_v29  ;;  %417 = vst.msk [vmem:[#allocation2 + $0x30] sm:$0xff] %vm410_vm1, %v2424_v2  ;;  %418 = vst.msk [vmem:[#allocation2 + $0x38] sm:$0xff] %vm410_vm1, %v2424_v2  ;;  %v1405_v29 = vld [vmem:[%s3073_s6 + $0x18] sm:$0xff]  ;;  %v1407_v4 = vld [vmem:[%s3073_s6 + $0x28] sm:$0xff] }
 0x114   : > { %2245 = vmatpush3.bf16.msra.mxu1 %v2244_v11  ;;  %v1024_v11 = vld [vmem:[%s2747_s18 + $0x10] sm:$0xff]  ;;  %419 = vst.msk [vmem:[#allocation2 + $0x40] sm:$0xff] %vm410_vm1, %v2424_v2  ;;  %420 = vst.msk [vmem:[#allocation2 + $0x48] sm:$0xff] %vm410_vm1, %v2424_v2  ;;  %v2262_v56 = vpack.c.bf16 %v1405_v29, %v1404_v28 }
 0x115   : > { %v2246_v33 = vpack.c.bf16 %v1001_v3, %v1000_v32  ;;  %v2182_v63 = vpop.f32.mrb[28].mxu0  ;;  %v1043_v13 = vunpack.c.h.bf16 %v1024_v11  ;;  %421 = vst.msk [vmem:[#allocation2 + $0x50] sm:$0xff] %vm410_vm1, %v2424_v2  ;;  %422 = vst.msk [vmem:[#allocation2 + $0x58] sm:$0xff] %vm410_vm1, %v2424_v2  ;;  %v1406_v3 = vld [vmem:[%s3073_s6 + $0x20] sm:$0xff] }
 0x116   : > { %v1003_v6 = vmul.f32 %v2182_v63, %v2786_v60  ;;  %v795_v36 = vpop.f32.mrb[29].mxu0  ;;  %v1038_v60 = vunpack.c.l.bf16 %v2752_v20  ;;  %423 = vst.msk [vmem:[#allocation2 + $0x60] sm:$0xff] %vm410_vm1, %v2424_v2  ;;  %424 = vst.msk [vmem:[#allocation2 + $0x68] sm:$0xff] %vm410_vm1, %v2424_v2  ;;  %2263 = vmatprep.subr.bf16.mxu0 %v2262_v56  ;;  %v2266_v32 = vpack.c.bf16 %v1407_v4, %v1406_v3  ;;  %v1409_v63 = vld [vmem:[%s3073_s6 + $0x38] sm:$0xff] }
 0x117   : > { %v1002_v7 = vmul.f32 %v2788_v62, %v795_v36  ;;  %2247 = vmatprep.subr.bf16.mxu1 %v2246_v33  ;;  %v1041_v62 = vunpack.c.h.bf16 %v1023_v10  ;;  %425 = vst.msk [vmem:[#allocation2 + $0x70] sm:$0xff] %vm410_vm1, %v2424_v2  ;;  %426 = vst.msk [vmem:[#allocation2 + $0x78] sm:$0xff] %vm410_vm1, %v2424_v2  ;;  %2265 = vmatpush3.bf16.msra.mxu0 %v2262_v56  ;;  %v1408_v33 = vld [vmem:[%s3073_s6 + $0x30] sm:$0xff] }
 0x118   : > { %2249 = vmatpush3.bf16.msra.mxu1 %v2248_v18  ;;  %v1044_v18 = vunpack.c.l.bf16 %v1025_v14  ;;  %2267 = vmatprep.subr.bf16.mxu0 %v2266_v32 }
 0x119   : > { %v2250_v37 = vpack.c.bf16 %v1003_v6, %v1002_v7  ;;  %v2185_v5 = vpop.f32.mrb[30].mxu0  ;;  %v2270_v6 = vpack.c.bf16 %v1409_v63, %v1408_v33  ;;  %v1006_v7 = vld [vmem:[#allocation2] sm:$0xff]  ;;  %v1311_v63 = vpop.permute.xlu1 %1310 }
 0x11a   : > { %v1005_v40 = vmul.f32 %v2185_v5, %v2792_v15  ;;  %v805_v8 = vpop.f32.mrb[31].mxu0  ;;  %v1042_v15 = vunpack.c.l.bf16 %v1024_v11  ;;  %v1008_v11 = vld [vmem:[#allocation2 + $0x10] sm:$0xff]  ;;  %v1013_v2 = vld [vmem:[#allocation2 + $0x38] sm:$0xff] }
 0x11b   : > { %v1004_v41 = vmul.f32 %v2794_v17, %v805_v8  ;;  %2251 = vmatprep.subr.bf16.mxu1 %v2250_v37  ;;  %v1026_v17 = vld [vmem:[%s2747_s18 + $0x20] sm:$0xff]  ;;  %2269 = vmatpush3.bf16.msra.mxu0 %v2266_v32 }
 0x11c   : > { %2253 = vmatpush3.bf16.msra.mxu1 %v2252_v31  ;;  %v1047_v20 = vunpack.c.h.bf16 %v1026_v17  ;;  %v1046_v22 = vunpack.c.l.bf16 %v1026_v17  ;;  %v1051_v31 = vunpack.c.h.bf16 %v1028_v27  ;;  %2271 = vmatprep.subr.bf16.mxu0 %v2270_v6  ;;  %v1009_v17 = vld [vmem:[#allocation2 + $0x18] sm:$0xff] }
 0x11d   : > { %v2254_v9 = vpack.c.bf16 %v1005_v40, %v1004_v41  ;;  %v1007_v41 = vld [vmem:[#allocation2 + $0x8] sm:$0xff] }
 0x11f   : > { %2255 = vmatprep.subr.bf16.mxu1 %v2254_v9  ;;  %2273 = vmatpush3.bf16.msra.mxu0 %v2270_v6  ;;  %v1014_v6 = vld [vmem:[#allocation2 + $0x40] sm:$0xff] }
 0x120   : > { %2257 = vmatpush3.bf16.msra.mxu1 %v2256_v43  ;;  %v1055_v43 = vunpack.c.h.bf16 %v1030_v39 }
 0x123   : > { %1135 = vmatmul.mubr.f32.vlgmr.msra.gmra.mrb[0].mxu1 %v1038_v60 }
 0x124   : > { %1139 = vmatprep.mubr.f32.mxu1 %v1041_v62 }
 0x127   : > { %1140 = vmatmul.mubr.f32.gmra.mrb[2].mxu1 %v1040_v12 }
 0x128   : > { %1144 = vmatprep.mubr.f32.mxu1 %v1043_v13 }
 0x12b   : > { %1145 = vmatmul.mubr.f32.gmra.mrb[4].mxu1 %v1042_v15 }
 0x12c   : > { %1149 = vmatprep.mubr.f32.mxu1 %v1045_v16  ;;  %v1286_v16 = vpop.permute.xlu0 %1285 }
 0x12f   : > { %1150 = vmatmul.mubr.f32.gmra.mrb[6].mxu1 %v1044_v18 }
 0x130   : > { %1154 = vmatprep.mubr.f32.mxu1 %v1047_v20  ;;  %v1296_v47 = vpop.permute.xlu0 %1295 }
 0x133   : > { %1155 = vmatmul.mubr.f32.gmra.mrb[8].mxu1 %v1046_v22 }
 0x134   : > { %1159 = vmatprep.mubr.f32.mxu1 %v1049_v26 }
 0x137   : > { %1160 = vmatmul.mubr.f32.gmra.mrb[10].mxu1 %v1048_v30 }
 0x138   : > { %1164 = vmatprep.mubr.f32.mxu1 %v1051_v31 }
 0x13b   : > { %1165 = vmatmul.mubr.f32.gmra.mrb[12].mxu1 %v1050_v35  ;;  %v1010_v35 = vld [vmem:[#allocation2 + $0x20] sm:$0xff] }
 0x13c   : > { %1169 = vmatprep.mubr.f32.mxu1 %v1053_v38 }
 0x13f   : > { %1170 = vmatmul.mubr.f32.gmra.mrb[14].mxu1 %v1052_v42 }
 0x140   : > { %1174 = vmatprep.mubr.f32.mxu1 %v1055_v43 }
 0x143   : > { %1175 = vmatmul.mubr.f32.gmra.mrb[16].mxu1 %v1054_v45 }
 0x144   : > { %1179 = vmatprep.mubr.f32.mxu1 %v1057_v46 }
 0x147   : > { %1180 = vmatmul.mubr.f32.gmra.mrb[18].mxu1 %v1056_v48  ;;  %v1011_v48 = vld [vmem:[#allocation2 + $0x28] sm:$0xff] }
 0x148   : > { %1184 = vmatprep.mubr.f32.mxu1 %v1059_v49 }
 0x14b   : > { %1185 = vmatmul.mubr.f32.gmra.mrb[20].mxu1 %v1058_v52 }
 0x14c   : > { %1189 = vmatprep.mubr.f32.mxu1 %v1061_v53 }
 0x14f   : > { %1190 = vmatmul.mubr.f32.gmra.mrb[22].mxu1 %v1060_v55 }
 0x150   : > { %1194 = vmatprep.mubr.f32.mxu1 %v1063_v57 }
 0x153   : > { %1195 = vmatmul.mubr.f32.gmra.mrb[24].mxu1 %v1062_v59  ;;  %v1012_v59 = vld [vmem:[#allocation2 + $0x30] sm:$0xff] }
 0x154   : > { %1199 = vmatprep.mubr.f32.mxu1 %v1065_v23 }
 0x157   : > { %1200 = vmatmul.mubr.f32.gmra.mrb[26].mxu1 %v1064_v61 }
 0x158   : > { %1204 = vmatprep.mubr.f32.mxu1 %v1067_v0 }
 0x15b   : > { %1205 = vmatmul.mubr.f32.gmra.mrb[28].mxu1 %v1066_v25 }
 0x15c   : > { %1209 = vmatprep.mubr.f32.mxu1 %v1069_v51 }
 0x15f   : > { %1210 = vmatmul.mubr.f32.gmra.mrb[30].mxu1 %v1068_v1  ;;  %v1306_v1 = vpop.permute.xlu0 %1305 }
 0x1f6   : > { %v2064_v36 = vpop.f32.mrb[0].mxu1 }
 0x1f7   : > { %v2065_v37 = vpop.f32.mrb[1].mxu1 }
 0x1f8   : > { %v2066_v5 = vadd.f32 %v2065_v37, %v2064_v36 }
 0x1fa   : > { %v1215_v40 = vadd.f32 %v2066_v5, %v1006_v7  ;;  %v2067_v8 = vpop.f32.mrb[2].mxu1 }
 0x1fb   : > { %v2068_v9 = vpop.f32.mrb[3].mxu1 }
 0x1fc   : > { %1232 = vst.msk [vmem:[#allocation2] sm:$0xff] %vm410_vm1, %v1215_v40  ;;  %v2069_v10 = vadd.f32 %v2068_v9, %v2067_v8  ;;  %v1316_v9 = vpop.permute.xlu0 %1315 }
 0x1fe   : > { %v1216_v60 = vadd.f32 %v2069_v10, %v1007_v41  ;;  %v2070_v62 = vpop.f32.mrb[4].mxu1  ;;  %v1015_v10 = vld [vmem:[#allocation2 + $0x48] sm:$0xff] }
 0x1ff   : > { %v2071_v12 = vpop.f32.mrb[5].mxu1 }
 0x200   : > { %1233 = vst.msk [vmem:[#allocation2 + $0x8] sm:$0xff] %vm410_vm1, %v1216_v60  ;;  %v2072_v13 = vadd.f32 %v2071_v12, %v2070_v62 }
 0x202   : > { %v1217_v14 = vadd.f32 %v2072_v13, %v1008_v11  ;;  %v2073_v15 = vpop.f32.mrb[6].mxu1 }
 0x203   : > { %v2074_v18 = vpop.f32.mrb[7].mxu1  ;;  %v1267_v20 = vld [vmem:[#allocation2] sm:$0xff] }
 0x204   : > { %1234 = vst.msk [vmem:[#allocation2 + $0x10] sm:$0xff] %vm410_vm1, %v1217_v14  ;;  %v2075_v22 = vadd.f32 %v2074_v18, %v2073_v15  ;;  %v1363_v26 = vmul.f32 %v1286_v16, %v1267_v20  ;;  %v1321_v16 = vpop.permute.xlu1 %1320 }
 0x206   : > { %v1218_v27 = vadd.f32 %v2075_v22, %v1009_v17  ;;  %v2076_v30 = vpop.f32.mrb[8].mxu1  ;;  %v1386_v31 = vadd.f32 %v2871_v21, %v1363_v26  ;;  %v1016_v17 = vld [vmem:[#allocation2 + $0x50] sm:$0xff] }
 0x207   : > { %v2077_v38 = vpop.f32.mrb[9].mxu1  ;;  %v1268_v39 = vld [vmem:[#allocation2 + $0x8] sm:$0xff] }
 0x208   : > { %1235 = vst.msk [vmem:[#allocation2 + $0x18] sm:$0xff] %vm410_vm1, %v1218_v27  ;;  %v2078_v42 = vadd.f32 %v2077_v38, %v2076_v30  ;;  %2202 = vmatprep.mubr.msk.f32.mxu0 %vm410_vm1, %v1386_v31  ;;  %v1364_v43 = vmul.f32 %v1291_v34, %v1268_v39  ;;  %v1326_v34 = vpop.permute.xlu0 %1325 }
 0x20a   : > { %v1219_v44 = vadd.f32 %v2078_v42, %v1010_v35  ;;  %v2079_v45 = vpop.f32.mrb[10].mxu1  ;;  %v1387_v46 = vadd.f32 %v2871_v21, %v1364_v43  ;;  %v1017_v35 = vld [vmem:[#allocation2 + $0x58] sm:$0xff] }
 0x20b   : > { %v2080_v49 = vpop.f32.mrb[11].mxu1  ;;  %v1269_v50 = vld [vmem:[#allocation2 + $0x10] sm:$0xff] }
 0x20c   : > { %1236 = vst.msk [vmem:[#allocation2 + $0x20] sm:$0xff] %vm410_vm1, %v1219_v44  ;;  %v2081_v52 = vadd.f32 %v2080_v49, %v2079_v45  ;;  %2203 = vmatmul.mubr.msk.f32.vlgmr.msra.gmra.mrb[32].mxu0 %vm410_vm1, %v1387_v46  ;;  %v1365_v53 = vmul.f32 %v1296_v47, %v1269_v50  ;;  %v1331_v47 = vpop.permute.xlu1 %1330 }
 0x20e   : > { %v1220_v54 = vadd.f32 %v2081_v52, %v1011_v48  ;;  %v2082_v55 = vpop.f32.mrb[12].mxu1  ;;  %v1388_v57 = vadd.f32 %v2871_v21, %v1365_v53  ;;  %v1018_v48 = vld [vmem:[#allocation2 + $0x60] sm:$0xff] }
 0x20f   : > { %v2083_v23 = vpop.f32.mrb[13].mxu1  ;;  %v1270_v19 = vld [vmem:[#allocation2 + $0x18] sm:$0xff] }
 0x210   : > { %1237 = vst.msk [vmem:[#allocation2 + $0x28] sm:$0xff] %vm410_vm1, %v1220_v54  ;;  %v2084_v61 = vadd.f32 %v2083_v23, %v2082_v55  ;;  %2205 = vmatprep.mubr.msk.f32.mxu0 %vm410_vm1, %v1388_v57  ;;  %v1366_v0 = vmul.f32 %v1301_v58, %v1270_v19  ;;  %v1336_v58 = vpop.permute.xlu0 %1335 }
 0x212   : > { %v1221_v24 = vadd.f32 %v2084_v61, %v1012_v59  ;;  %v2085_v25 = vpop.f32.mrb[14].mxu1  ;;  %v1389_v51 = vadd.f32 %v2871_v21, %v1366_v0  ;;  %v1019_v59 = vld [vmem:[#allocation2 + $0x68] sm:$0xff] }
 0x213   : > { %v2086_v28 = vpop.f32.mrb[15].mxu1  ;;  %v1271_v29 = vld [vmem:[#allocation2 + $0x20] sm:$0xff] }
 0x214   : > { %1238 = vst.msk [vmem:[#allocation2 + $0x30] sm:$0xff] %vm410_vm1, %v1221_v24  ;;  %v2087_v56 = vadd.f32 %v2086_v28, %v2085_v25  ;;  %2206 = vmatmul.mubr.msk.f32.gmra.mrb[34].mxu0 %vm410_vm1, %v1389_v51  ;;  %v1367_v3 = vmul.f32 %v1306_v1, %v1271_v29  ;;  %v1341_v1 = vpop.permute.xlu1 %1340 }
 0x216   : > { %v1222_v4 = vadd.f32 %v2087_v56, %v1013_v2  ;;  %v2088_v32 = vpop.f32.mrb[16].mxu1  ;;  %v1390_v33 = vadd.f32 %v2871_v21, %v1367_v3  ;;  %v1020_v2 = vld [vmem:[#allocation2 + $0x70] sm:$0xff] }
 0x217   : > { %v2089_v36 = vpop.f32.mrb[17].mxu1  ;;  %v1272_v7 = vld [vmem:[#allocation2 + $0x28] sm:$0xff] }
 0x218   : > { %1239 = vst.msk [vmem:[#allocation2 + $0x38] sm:$0xff] %vm410_vm1, %v1222_v4  ;;  %v2090_v37 = vadd.f32 %v2089_v36, %v2088_v32  ;;  %2208 = vmatprep.mubr.msk.f32.mxu0 %vm410_vm1, %v1390_v33  ;;  %v1368_v5 = vmul.f32 %v1311_v63, %v1272_v7  ;;  %v1346_v63 = vpop.permute.xlu0 %1345 }
 0x21a   : > { %v1223_v40 = vadd.f32 %v2090_v37, %v1014_v6  ;;  %v2091_v8 = vpop.f32.mrb[18].mxu1  ;;  %v1391_v41 = vadd.f32 %v2871_v21, %v1368_v5  ;;  %v1021_v6 = vld [vmem:[#allocation2 + $0x78] sm:$0xff] }
 0x21b   : > { %v2092_v60 = vpop.f32.mrb[19].mxu1  ;;  %v1273_v62 = vld [vmem:[#allocation2 + $0x30] sm:$0xff] }
 0x21c   : > { %1240 = vst.msk [vmem:[#allocation2 + $0x40] sm:$0xff] %vm410_vm1, %v1223_v40  ;;  %v2093_v11 = vadd.f32 %v2092_v60, %v2091_v8  ;;  %2209 = vmatmul.mubr.msk.f32.gmra.mrb[36].mxu0 %vm410_vm1, %v1391_v41  ;;  %v1369_v12 = vmul.f32 %v1316_v9, %v1273_v62  ;;  %v1351_v41 = vpop.permute.xlu1 %1350  ;;  %v1356_v62 = vpop.permute.xlu0 %1355 }
 0x21e   : > { %v1224_v13 = vadd.f32 %v2093_v11, %v1015_v10  ;;  %v2094_v14 = vpop.f32.mrb[20].mxu1  ;;  %v1392_v15 = vadd.f32 %v2871_v21, %v1369_v12 }
 0x21f   : > { %v2095_v18 = vpop.f32.mrb[21].mxu1  ;;  %v1274_v20 = vld [vmem:[#allocation2 + $0x38] sm:$0xff] }
 0x220   : > { %1241 = vst.msk [vmem:[#allocation2 + $0x48] sm:$0xff] %vm410_vm1, %v1224_v13  ;;  %v2096_v22 = vadd.f32 %v2095_v18, %v2094_v14  ;;  %2211 = vmatprep.mubr.msk.f32.mxu0 %vm410_vm1, %v1392_v15  ;;  %v1370_v26 = vmul.f32 %v1321_v16, %v1274_v20  ;;  %v1361_v14 = vpop.permute.xlu1 %1360  ;;  %v2922_v18 = vld [vmem:[%s3074_s7] ss:$0 sm:$0xff] }
 0x222   : > { %v1225_v27 = vadd.f32 %v2096_v22, %v1016_v17  ;;  %v2097_v30 = vpop.f32.mrb[22].mxu1  ;;  %v1393_v31 = vadd.f32 %v2871_v21, %v1370_v26 }
 0x223   : > { %v2098_v38 = vpop.f32.mrb[23].mxu1  ;;  %v1275_v39 = vld [vmem:[#allocation2 + $0x40] sm:$0xff] }
 0x224   : > { %1242 = vst.msk [vmem:[#allocation2 + $0x50] sm:$0xff] %vm410_vm1, %v1225_v27  ;;  %v2099_v42 = vadd.f32 %v2098_v38, %v2097_v30  ;;  %2212 = vmatmul.mubr.msk.f32.gmra.mrb[38].mxu0 %vm410_vm1, %v1393_v31  ;;  %v1371_v43 = vmul.f32 %v1326_v34, %v1275_v39 }
 0x226   : > { %v1226_v44 = vadd.f32 %v2099_v42, %v1017_v35  ;;  %v2100_v45 = vpop.f32.mrb[24].mxu1  ;;  %v1394_v46 = vadd.f32 %v2871_v21, %v1371_v43 }
 0x227   : > { %v2101_v49 = vpop.f32.mrb[25].mxu1  ;;  %v1276_v50 = vld [vmem:[#allocation2 + $0x48] sm:$0xff] }
 0x228   : > { %1243 = vst.msk [vmem:[#allocation2 + $0x58] sm:$0xff] %vm410_vm1, %v1226_v44  ;;  %v2102_v52 = vadd.f32 %v2101_v49, %v2100_v45  ;;  %2214 = vmatprep.mubr.msk.f32.mxu0 %vm410_vm1, %v1394_v46  ;;  %v1372_v53 = vmul.f32 %v1331_v47, %v1276_v50 }
 0x22a   : > { %v1227_v54 = vadd.f32 %v2102_v52, %v1018_v48  ;;  %v2103_v55 = vpop.f32.mrb[26].mxu1  ;;  %v1395_v57 = vadd.f32 %v2871_v21, %v1372_v53 }
 0x22b   : > { %v2104_v23 = vpop.f32.mrb[27].mxu1  ;;  %v1277_v19 = vld [vmem:[#allocation2 + $0x50] sm:$0xff] }
 0x22c   : > { %1244 = vst.msk [vmem:[#allocation2 + $0x60] sm:$0xff] %vm410_vm1, %v1227_v54  ;;  %v2105_v61 = vadd.f32 %v2104_v23, %v2103_v55  ;;  %2215 = vmatmul.mubr.msk.f32.gmra.mrb[40].mxu0 %vm410_vm1, %v1395_v57  ;;  %v1373_v0 = vmul.f32 %v1336_v58, %v1277_v19 }
 0x22e   : > { %v1228_v24 = vadd.f32 %v2105_v61, %v1019_v59  ;;  %v2106_v25 = vpop.f32.mrb[28].mxu1  ;;  %v1396_v51 = vadd.f32 %v2871_v21, %v1373_v0 }
 0x22f   : > { %v2107_v28 = vpop.f32.mrb[29].mxu1  ;;  %v1278_v29 = vld [vmem:[#allocation2 + $0x58] sm:$0xff] }
 0x230   : > { %1245 = vst.msk [vmem:[#allocation2 + $0x68] sm:$0xff] %vm410_vm1, %v1228_v24  ;;  %v2108_v56 = vadd.f32 %v2107_v28, %v2106_v25  ;;  %2217 = vmatprep.mubr.msk.f32.mxu0 %vm410_vm1, %v1396_v51  ;;  %v1374_v3 = vmul.f32 %v1341_v1, %v1278_v29 }
 0x232   : > { %v1229_v4 = vadd.f32 %v2108_v56, %v1020_v2  ;;  %v2109_v32 = vpop.f32.mrb[30].mxu1  ;;  %v1397_v33 = vadd.f32 %v2871_v21, %v1374_v3 }
 0x233   : > { %v2110_v36 = vpop.f32.mrb[31].mxu1  ;;  %v1279_v7 = vld [vmem:[#allocation2 + $0x60] sm:$0xff] }
 0x234   : > { %1246 = vst.msk [vmem:[#allocation2 + $0x70] sm:$0xff] %vm410_vm1, %v1229_v4  ;;  %v2111_v37 = vadd.f32 %v2110_v36, %v2109_v32  ;;  %2218 = vmatmul.mubr.msk.f32.gmra.mrb[42].mxu0 %vm410_vm1, %v1397_v33  ;;  %v1375_v5 = vmul.f32 %v1346_v63, %v1279_v7 }
 0x236   : > { %v1230_v40 = vadd.f32 %v2111_v37, %v1021_v6  ;;  %v1398_v8 = vadd.f32 %v2871_v21, %v1375_v5 }
 0x237   : > { %v1280_v9 = vld [vmem:[#allocation2 + $0x68] sm:$0xff] }
 0x238   : > { %1247 = vst.msk [vmem:[#allocation2 + $0x78] sm:$0xff] %vm410_vm1, %v1230_v40  ;;  %2220 = vmatprep.mubr.msk.f32.mxu0 %vm410_vm1, %v1398_v8  ;;  %v1376_v10 = vmul.f32 %v1351_v41, %v1280_v9 }
 0x23a   : > { %v1399_v60 = vadd.f32 %v2871_v21, %v1376_v10 }
 0x23b   : > { %v1281_v11 = vld [vmem:[#allocation2 + $0x70] sm:$0xff] }
 0x23c   : > { %2221 = vmatmul.mubr.msk.f32.gmra.mrb[44].mxu0 %vm410_vm1, %v1399_v60  ;;  %v1377_v12 = vmul.f32 %v1356_v62, %v1281_v11 }
 0x23e   : > { %v1400_v13 = vadd.f32 %v2871_v21, %v1377_v12 }
 0x23f   : > { %v1282_v15 = vld [vmem:[#allocation2 + $0x78] sm:$0xff] }
 0x240   : > { %2223 = vmatprep.mubr.msk.f32.mxu0 %vm410_vm1, %v1400_v13  ;;  %v1378_v16 = vmul.f32 %v1361_v14, %v1282_v15 }
 0x242   : > { %v1401_v17 = vadd.f32 %v2871_v21, %v1378_v16 }
 0x244   : > { %2224 = vmatmul.mubr.msk.f32.gmra.mrb[46].mxu0 %vm410_vm1, %v1401_v17 }
 0x2df   : > { %v2204_v20 = vpop.f32.mrb[32].mxu0 }
 0x2e0   : > { %v2925_v22 = vadd.f32 %v2204_v20, %v2922_v18  ;;  %v1531_v26 = vpop.f32.mrb[33].mxu0 }
 0x2e1   : > { %v2928_v27 = vadd.f32 %v2922_v18, %v1531_v26 }
 0x2e2   : > { %2303 = vtanh.f32 %v2925_v22  ;;  %v1611_v5 = vsub.f32 0.0, %v2925_v22 }
 0x2e3   : > { %2305 = vtanh.f32 %v2928_v27  ;;  %v1610_v40 = vsub.f32 0.0, %v2928_v27 }
 0x2e4   : > { %v1628_v8 = vmul.f32 1.442695, %v1611_v5 }
 0x2e5   : > { %v1626_v41 = vmul.f32 1.442695, %v1610_v40 }
 0x2e7   : > { %v2207_v21 = vpop.f32.mrb[34].mxu0 }
 0x2e8   : > { %v2933_v30 = vadd.f32 %v2207_v21, %v2922_v18  ;;  %v1541_v31 = vpop.f32.mrb[35].mxu0 }
 0x2e9   : > { %v2936_v34 = vadd.f32 %v2922_v18, %v1541_v31 }
 0x2ea   : > { %2307 = vtanh.f32 %v2933_v30  ;;  %v1613_v9 = vsub.f32 0.0, %v2933_v30 }
 0x2eb   : > { %2309 = vtanh.f32 %v2936_v34  ;;  %v1612_v10 = vsub.f32 0.0, %v2936_v34 }
 0x2ec   : > { %v2304_v35 = vpop.eup %2303  ;;  %v1632_v60 = vmul.f32 1.442695, %v1613_v9 }
 0x2ed   : > { %v2306_v38 = vpop.eup %2305  ;;  %1740 = vrot.lane.b32.xlu1 %v2304_v35, %s2425_s22  ;;  %v1630_v62 = vmul.f32 1.442695, %v1612_v10 }
 0x2ee   : > { %1738 = vrot.lane.b32.xlu0 %v2306_v38, %s2425_s22 }
 0x2ef   : > { %v2210_v39 = vpop.f32.mrb[36].mxu0 }
 0x2f0   : > { %v2943_v42 = vadd.f32 %v2210_v39, %v2922_v18  ;;  %v1551_v43 = vpop.f32.mrb[37].mxu0 }
 0x2f1   : > { %v2946_v44 = vadd.f32 %v2922_v18, %v1551_v43 }
 0x2f2   : > { %2311 = vtanh.f32 %v2943_v42  ;;  %v1615_v11 = vsub.f32 0.0, %v2943_v42 }
 0x2f3   : > { %2313 = vtanh.f32 %v2946_v44  ;;  %v1614_v13 = vsub.f32 0.0, %v2946_v44 }
 0x2f4   : > { %v2308_v45 = vpop.eup %2307  ;;  %v1636_v15 = vmul.f32 1.442695, %v1615_v11 }
 0x2f5   : > { %v2310_v46 = vpop.eup %2309  ;;  %1744 = vrot.lane.b32.xlu1 %v2308_v45, %s2425_s22  ;;  %v1634_v17 = vmul.f32 1.442695, %v1614_v13 }
 0x2f6   : > { %1742 = vrot.lane.b32.xlu0 %v2310_v46, %s2425_s22 }
 0x2f7   : > { %v2213_v47 = vpop.f32.mrb[38].mxu0 }
 0x2f8   : > { %v2953_v48 = vadd.f32 %v2213_v47, %v2922_v18  ;;  %v1561_v49 = vpop.f32.mrb[39].mxu0 }
 0x2f9   : > { %v2956_v50 = vadd.f32 %v2922_v18, %v1561_v49 }
 0x2fa   : > { %2315 = vtanh.f32 %v2953_v48  ;;  %v1617_v20 = vsub.f32 0.0, %v2953_v48 }
 0x2fb   : > { %2317 = vtanh.f32 %v2956_v50  ;;  %v1616_v26 = vsub.f32 0.0, %v2956_v50 }
 0x2fc   : > { %v2312_v52 = vpop.eup %2311  ;;  %v1640_v21 = vmul.f32 1.442695, %v1617_v20 }
 0x2fd   : > { %v2314_v53 = vpop.eup %2313  ;;  %1748 = vrot.lane.b32.xlu1 %v2312_v52, %s2425_s22  ;;  %v1638_v31 = vmul.f32 1.442695, %v1616_v26 }
 0x2fe   : > { %1746 = vrot.lane.b32.xlu0 %v2314_v53, %s2425_s22 }
 0x2ff   : > { %v2216_v54 = vpop.f32.mrb[40].mxu0 }
 0x300   : > { %v2963_v55 = vadd.f32 %v2216_v54, %v2922_v18  ;;  %v1571_v57 = vpop.f32.mrb[41].mxu0 }
 0x301   : > { %v2966_v58 = vadd.f32 %v2922_v18, %v1571_v57 }
 0x302   : > { %2319 = vtanh.f32 %v2963_v55  ;;  %v1619_v34 = vsub.f32 0.0, %v2963_v55 }
 0x303   : > { %2321 = vtanh.f32 %v2966_v58  ;;  %v1618_v39 = vsub.f32 0.0, %v2966_v58 }
 0x304   : > { %v2316_v59 = vpop.eup %2315  ;;  %v1644_v43 = vmul.f32 1.442695, %v1619_v34 }
 0x305   : > { %v2318_v23 = vpop.eup %2317  ;;  %1752 = vrot.lane.b32.xlu1 %v2316_v59, %s2425_s22  ;;  %v1642_v47 = vmul.f32 1.442695, %v1618_v39 }
 0x306   : > { %1750 = vrot.lane.b32.xlu0 %v2318_v23, %s2425_s22 }
 0x307   : > { %v2219_v19 = vpop.f32.mrb[42].mxu0 }
 0x308   : > { %v2973_v61 = vadd.f32 %v2219_v19, %v2922_v18  ;;  %v1581_v0 = vpop.f32.mrb[43].mxu0 }
 0x309   : > { %v2976_v24 = vadd.f32 %v2922_v18, %v1581_v0 }
 0x30a   : > { %2323 = vtanh.f32 %v2973_v61  ;;  %v1621_v48 = vsub.f32 0.0, %v2973_v61 }
 0x30b   : > { %2325 = vtanh.f32 %v2976_v24  ;;  %v1620_v58 = vsub.f32 0.0, %v2976_v24 }
 0x30c   : > { %v2320_v25 = vpop.eup %2319  ;;  %v1648_v19 = vmul.f32 1.442695, %v1621_v48 }
 0x30d   : > { %v2322_v51 = vpop.eup %2321  ;;  %1756 = vrot.lane.b32.xlu1 %v2320_v25, %s2425_s22 }
 0x30e   : > { %1754 = vrot.lane.b32.xlu0 %v2322_v51, %s2425_s22  ;;  %v1646_v51 = vmul.f32 1.442695, %v1620_v58 }
 0x30f   : > { %v2222_v1 = vpop.f32.mrb[44].mxu0 }
 0x310   : > { %v2983_v2 = vadd.f32 %v2222_v1, %v2922_v18  ;;  %v1591_v28 = vpop.f32.mrb[45].mxu0 }
 0x311   : > { %v2986_v29 = vadd.f32 %v2922_v18, %v1591_v28 }
 0x312   : > { %2327 = vtanh.f32 %v2983_v2 }
 0x313   : > { %2329 = vtanh.f32 %v2986_v29 }
 0x314   : > { %v2324_v56 = vpop.eup %2323 }
 0x315   : > { %v2326_v3 = vpop.eup %2325  ;;  %1760 = vrot.lane.b32.xlu1 %v2324_v56, %s2425_s22 }
 0x316   : > { %1758 = vrot.lane.b32.xlu0 %v2326_v3, %s2425_s22 }
 0x317   : > { %v2225_v4 = vpop.f32.mrb[46].mxu0 }
 0x318   : > { %v2993_v32 = vadd.f32 %v2225_v4, %v2922_v18  ;;  %v1601_v33 = vpop.f32.mrb[47].mxu0  ;;  %v1623_v4 = vsub.f32 0.0, %v2983_v2 }
 0x319   : > { %v2996_v63 = vadd.f32 %v2922_v18, %v1601_v33 }
 0x31a   : > { %2331 = vtanh.f32 %v2993_v32  ;;  %v1625_v11 = vsub.f32 0.0, %v2993_v32 }
 0x31b   : > { %2333 = vtanh.f32 %v2996_v63 }
 0x31c   : > { %v2328_v6 = vpop.eup %2327  ;;  %2335 = vpow2.f32 %v1628_v8 }
 0x31d   : > { %v2330_v36 = vpop.eup %2329  ;;  %1764 = vrot.lane.b32.xlu1 %v2328_v6, %s2425_s22  ;;  %2337 = vpow2.f32 %v1626_v41  ;;  %v1652_v41 = vmul.f32 1.442695, %v1623_v4 }
 0x31e   : > { %1762 = vrot.lane.b32.xlu0 %v2330_v36, %s2425_s22  ;;  %2339 = vpow2.f32 %v1632_v60  ;;  %v1622_v36 = vsub.f32 0.0, %v2986_v29 }
 0x31f   : > { %2341 = vpow2.f32 %v1630_v62 }
 0x320   : > { %2343 = vpow2.f32 %v1636_v15  ;;  %v1650_v9 = vmul.f32 1.442695, %v1622_v36 }
 0x324   : > { %v2332_v7 = vpop.eup %2331 }
 0x325   : > { %v2334_v37 = vpop.eup %2333  ;;  %1768 = vrot.lane.b32.xlu1 %v2332_v7, %s2425_s22 }
 0x326   : > { %1766 = vrot.lane.b32.xlu0 %v2334_v37, %s2425_s22  ;;  %v2336_v12 = vpop.eup %2335 }
 0x327   : > { %v2338_v14 = vpop.eup %2337  ;;  %v1659_v16 = vadd.f32 1.0, %v2336_v12 }
 0x328   : > { %v1658_v18 = vadd.f32 1.0, %v2338_v14  ;;  %v2340_v22 = vpop.eup %2339  ;;  %v1624_v14 = vsub.f32 0.0, %v2996_v63 }
 0x329   : > { %2345 = vrcp.f32 %v1659_v16  ;;  %v2342_v27 = vpop.eup %2341  ;;  %v1661_v30 = vadd.f32 1.0, %v2340_v22  ;;  %v1656_v22 = vmul.f32 1.442695, %v1625_v11 }
 0x32a   : > { %2347 = vpow2.f32 %v1634_v17  ;;  %v1660_v35 = vadd.f32 1.0, %v2342_v27  ;;  %v2344_v38 = vpop.eup %2343  ;;  %v1654_v26 = vmul.f32 1.442695, %v1624_v14 }
 0x32b   : > { %2349 = vrcp.f32 %v1658_v18  ;;  %v1663_v46 = vadd.f32 1.0, %v2344_v38 }
 0x32c   : > { %2351 = vpow2.f32 %v1640_v21 }
 0x32d   : > { %2353 = vrcp.f32 %v1661_v30 }
 0x32e   : > { %2355 = vpow2.f32 %v1638_v31 }
 0x32f   : > { %2357 = vrcp.f32 %v1660_v35 }
 0x330   : > { %2359 = vpow2.f32 %v1644_v43 }
 0x331   : > { %2361 = vrcp.f32 %v1663_v46 }
 0x332   : > { %2363 = vpow2.f32 %v1642_v47 }
 0x333   : > { %v2346_v42 = vpop.eup %2345 }
 0x334   : > { %v2348_v44 = vpop.eup %2347  ;;  %v1707_v49 = vsub.f32 1.0, %v2346_v42 }
 0x335   : > { %v2350_v45 = vpop.eup %2349  ;;  %v1662_v50 = vadd.f32 1.0, %v2348_v44 }
 0x336   : > { %v1706_v53 = vsub.f32 1.0, %v2350_v45  ;;  %v2352_v57 = vpop.eup %2351 }
 0x337   : > { %v2354_v23 = vpop.eup %2353  ;;  %2365 = vrcp.f32 %v1662_v50  ;;  %v1665_v25 = vadd.f32 1.0, %v2352_v57 }
 0x338   : > { %v2356_v61 = vpop.eup %2355  ;;  %2367 = vpow2.f32 %v1648_v19  ;;  %v1709_v1 = vsub.f32 1.0, %v2354_v23 }
 0x339   : > { %v2358_v0 = vpop.eup %2357  ;;  %v1664_v28 = vadd.f32 1.0, %v2356_v61  ;;  %2369 = vrcp.f32 %v1665_v25 }
 0x33a   : > { %v1708_v3 = vsub.f32 1.0, %v2358_v0  ;;  %v2360_v24 = vpop.eup %2359  ;;  %2371 = vpow2.f32 %v1646_v51 }
 0x33b   : > { %v2362_v37 = vpop.eup %2361  ;;  %2373 = vrcp.f32 %v1664_v28  ;;  %v1667_v40 = vadd.f32 1.0, %v2360_v24 }
 0x33c   : > { %v2364_v5 = vpop.eup %2363  ;;  %v1711_v2 = vsub.f32 1.0, %v2362_v37 }
 0x33d   : > { %v1666_v10 = vadd.f32 1.0, %v2364_v5  ;;  %2375 = vrcp.f32 %v1667_v40 }
 0x33e   : > { %2377 = vpow2.f32 %v1652_v41 }
 0x33f   : > { %2379 = vpow2.f32 %v1650_v9 }
 0x340   : > { %2381 = vrcp.f32 %v1666_v10 }
 0x341   : > { %v2366_v8 = vpop.eup %2365 }
 0x342   : > { %v1710_v62 = vsub.f32 1.0, %v2366_v8  ;;  %v2368_v29 = vpop.eup %2367 }
 0x343   : > { %v2370_v16 = vpop.eup %2369  ;;  %v1669_v18 = vadd.f32 1.0, %v2368_v29 }
 0x344   : > { %v2372_v17 = vpop.eup %2371  ;;  %v1713_v32 = vsub.f32 1.0, %v2370_v16 }
 0x345   : > { %v2374_v20 = vpop.eup %2373  ;;  %v1668_v27 = vadd.f32 1.0, %v2372_v17  ;;  %2383 = vrcp.f32 %v1669_v18 }
 0x346   : > { %v1712_v30 = vsub.f32 1.0, %v2374_v20  ;;  %2385 = vpow2.f32 %v1656_v22 }
 0x347   : > { %v2376_v34 = vpop.eup %2375  ;;  %2387 = vpow2.f32 %v1654_v26 }
 0x348   : > { %v2378_v38 = vpop.eup %2377  ;;  %2389 = vrcp.f32 %v1668_v27  ;;  %v1715_v44 = vsub.f32 1.0, %v2376_v34 }
 0x349   : > { %v2380_v39 = vpop.eup %2379  ;;  %v1671_v43 = vadd.f32 1.0, %v2378_v38 }
 0x34a   : > { %v2382_v42 = vpop.eup %2381  ;;  %v1670_v45 = vadd.f32 1.0, %v2380_v39 }
 0x34b   : > { %v1714_v47 = vsub.f32 1.0, %v2382_v42  ;;  %2391 = vrcp.f32 %v1671_v43 }
 0x34c   : > { %2393 = vrcp.f32 %v1670_v45 }
 0x34f   : > { %v2384_v50 = vpop.eup %2383 }
 0x350   : > { %v1717_v58 = vsub.f32 1.0, %v2384_v50 }
 0x35f   : > { %v1741_v52 = vpop.permute.xlu1 %1740 }
 0x360   : > { %v1787_v54 = vmul.f32 %v1741_v52, %v1707_v49  ;;  %v1739_v55 = vpop.permute.xlu0 %1738 }
 0x361   : > { %v1786_v59 = vmul.f32 %v1739_v55, %v1706_v53  ;;  %v2386_v53 = vpop.eup %2385 }
 0x362   : > { %1804 = vst.msk [vmem:[%s3019_s25 + $0x8] sm:$0xff] %vm1802_vm2, %v1787_v54  ;;  %v2388_v54 = vpop.eup %2387  ;;  %v1673_v57 = vadd.f32 1.0, %v2386_v53 }
 0x363   : > { %1803 = vst.msk [vmem:[%s3019_s25] sm:$0xff] %vm1802_vm2, %v1786_v59  ;;  %v2390_v55 = vpop.eup %2389  ;;  %v1672_v59 = vadd.f32 1.0, %v2388_v54 }
 0x364   : > { %v1716_v19 = vsub.f32 1.0, %v2390_v55  ;;  %2395 = vrcp.f32 %v1673_v57  ;;  %v2392_v51 = vpop.eup %2391 }
 0x365   : > { %2397 = vrcp.f32 %v1672_v59  ;;  %v1719_v28 = vsub.f32 1.0, %v2392_v51 }
 0x367   : > { %v1745_v56 = vpop.permute.xlu1 %1744 }
 0x368   : > { %v1789_v33 = vmul.f32 %v1745_v56, %v1709_v1  ;;  %v1743_v6 = vpop.permute.xlu0 %1742  ;;  %v2394_v1 = vpop.eup %2393 }
 0x369   : > { %v1788_v7 = vmul.f32 %v1743_v6, %v1708_v3  ;;  %v1718_v3 = vsub.f32 1.0, %v2394_v1 }
 0x36a   : > { %1806 = vst.msk [vmem:[%s3019_s25 + $0x18] sm:$0xff] %vm1802_vm2, %v1789_v33 }
 0x36b   : > { %1805 = vst.msk [vmem:[%s3019_s25 + $0x10] sm:$0xff] %vm1802_vm2, %v1788_v7 }
 0x36e   : > { %v2396_v6 = vpop.eup %2395 }
 0x36f   : > { %v1749_v60 = vpop.permute.xlu1 %1748  ;;  %v2398_v36 = vpop.eup %2397  ;;  %v1721_v7 = vsub.f32 1.0, %v2396_v6 }
 0x370   : > { %v1791_v12 = vmul.f32 %v1749_v60, %v1711_v2  ;;  %v1747_v13 = vpop.permute.xlu0 %1746  ;;  %v1720_v5 = vsub.f32 1.0, %v2398_v36 }
 0x371   : > { %v1790_v15 = vmul.f32 %v1747_v13, %v1710_v62 }
 0x372   : > { %1808 = vst.msk [vmem:[%s3019_s25 + $0x28] sm:$0xff] %vm1802_vm2, %v1791_v12 }
 0x373   : > { %1807 = vst.msk [vmem:[%s3019_s25 + $0x20] sm:$0xff] %vm1802_vm2, %v1790_v15 }
 0x377   : > { %v1753_v21 = vpop.permute.xlu1 %1752 }
 0x378   : > { %v1793_v63 = vmul.f32 %v1753_v21, %v1713_v32  ;;  %v1751_v31 = vpop.permute.xlu0 %1750 }
 0x379   : > { %v1792_v35 = vmul.f32 %v1751_v31, %v1712_v30 }
 0x37a   : > { %1810 = vst.msk [vmem:[%s3019_s25 + $0x38] sm:$0xff] %vm1802_vm2, %v1793_v63 }
 0x37b   : > { %1809 = vst.msk [vmem:[%s3019_s25 + $0x30] sm:$0xff] %vm1802_vm2, %v1792_v35 }
 0x37f   : > { %v1757_v46 = vpop.permute.xlu1 %1756 }
 0x380   : > { %v1795_v48 = vmul.f32 %v1757_v46, %v1715_v44  ;;  %v1755_v49 = vpop.permute.xlu0 %1754 }
 0x381   : > { %v1794_v52 = vmul.f32 %v1755_v49, %v1714_v47 }
 0x382   : > { %1812 = vst.msk [vmem:[%s3019_s25 + $0x48] sm:$0xff] %vm1802_vm2, %v1795_v48 }
 0x383   : > { %1811 = vst.msk [vmem:[%s3019_s25 + $0x40] sm:$0xff] %vm1802_vm2, %v1794_v52 }
 0x387   : > { %v1761_v23 = vpop.permute.xlu1 %1760 }
 0x388   : > { %v1797_v61 = vmul.f32 %v1761_v23, %v1717_v58  ;;  %v1759_v0 = vpop.permute.xlu0 %1758 }
 0x389   : > { %v1796_v25 = vmul.f32 %v1759_v0, %v1716_v19 }
 0x38a   : > { %1814 = vst.msk [vmem:[%s3019_s25 + $0x58] sm:$0xff] %vm1802_vm2, %v1797_v61 }
 0x38b   : > { %1813 = vst.msk [vmem:[%s3019_s25 + $0x50] sm:$0xff] %vm1802_vm2, %v1796_v25 }
 0x38f   : > { %v1765_v56 = vpop.permute.xlu1 %1764 }
 0x390   : > { %v1799_v24 = vmul.f32 %v1765_v56, %v1719_v28  ;;  %v1763_v4 = vpop.permute.xlu0 %1762 }
 0x391   : > { %v1798_v33 = vmul.f32 %v1763_v4, %v1718_v3 }
 0x392   : > { %1816 = vst.msk [vmem:[%s3019_s25 + $0x68] sm:$0xff] %vm1802_vm2, %v1799_v24 }
 0x393   : > { %1815 = vst.msk [vmem:[%s3019_s25 + $0x60] sm:$0xff] %vm1802_vm2, %v1798_v33 }
 0x397   : > { %v1769_v37 = vpop.permute.xlu1 %1768 }
 0x398   : > { %v1801_v40 = vmul.f32 %v1769_v37, %v1721_v7  ;;  %v1767_v8 = vpop.permute.xlu0 %1766 }
 0x399   : > { %v1800_v41 = vmul.f32 %v1767_v8, %v1720_v5 }
 0x39a   : > { %1818 = vst.msk [vmem:[%s3019_s25 + $0x78] sm:$0xff] %vm1802_vm2, %v1801_v40 }
 0x39b   : > { %1817 = vst.msk [vmem:[%s3019_s25 + $0x70] sm:$0xff] %vm1802_vm2, %v1800_v41 }
 0x39c PF: > { %s18_s29 = sadd.s32 1, %s2421_s29   ;;  %s3076_s27 = smov %s2417_s28 }
 0x39d   : > { %p15_p5 = scmp.ge.s32.totalorder %s18_s29, 4   ;;  %s3077_s28 = smov %s3079_s30 }
 0x39f   :  { %17 = sbr.rel (!%p15_p5) target bundleno = 2 (0x2), region = 99 }

// kernel: t_gcn2_forward.3
= control target key start
LH: loop header
LB: loop body
LE: loop exit
PB: predicated region body
PF: predicated region fallthrough
CT: control target
= control target key end

     0   :  { %s1056_s0 = inlined_call_operand.vmem [shape: f32[32,512], index: 0, kind: input, shape index: {}]   ;;  %s1057_s1 = inlined_call_operand.vmem [shape: f32[32,512], index: 1, kind: input, shape index: {}]   ;;  %s1058_s2 = inlined_call_operand.vmem [shape: f32[32,32], index: 2, kind: input, shape index: {}]   ;;  %s1059_s3 = inlined_call_operand.vmem [shape: f32[32,1], index: 3, kind: input, shape index: {}]   ;;  %s1060_s4 = inlined_call_operand.vmem [shape: f32[32,1], index: 4, kind: input, shape index: {}]   ;;  %s1061_s5 = inlined_call_operand.<no memory space> [shape: f32[1,1], index: 5, kind: input, shape index: {}]   ;;  %s1062_s6 = inlined_call_operand.hbm [shape: f32[1,512], index: 6, kind: output, shape index: {}]  }
   0x1   :  { %v11_v0 = vstv %s1061_s5 }
   0x2   :  { %12 = vst [vmem:[#allocation2] sm:$0x1] %v11_v0 }
   0x3   :  { %13 = vsyncpa [#allocation6], 0 }
   0x4   :  { %15 = vsyncpa [#allocation6 + $0x1], 0  ;;  %s893_s23 = smov 0   ;;  %s895_s24 = smov 0  }
   0x5   :  { %s897_s25 = smov 0   ;;  %s899_s26 = smov 0  }
   0x6 LB: > { %s697_s5 = sadd.s32 4294967295, %s849_s26   ;;  %s698_s27 = sadd.s32 4294967294, %s849_s26   ;;  %s849_s26 = sphi %s899_s26, %s1069_s26   ;;  %s845_s25 = sphi %s897_s25, %s1068_s25   ;;  %s841_s24 = sphi %s895_s24, %s1067_s24   ;;  %s837_s23 = sphi %s893_s23, %s1066_s23  }
   0x7   : > { %s916_s28 = sadd.s32 1, %s849_s26   ;;  %s28_s29 = sadd.s32 1, %s845_s25 }
   0x8   : > { %s25_s30 = ssub.s32 %s849_s26, %s916_s28  ;;  %p35_p0 = scmp.ne.s32.totalorder %s845_s25, %s841_s24 }
   0x9   : > { %p26_p1 = scmp.eq.s32.totalorder %s25_s30, 0  ;;  %p36_p2 = scmp.eq.s32.totalorder %s849_s26, 0 }
   0xa   : > { %p175_p3 = scmp.eq.s32.totalorder %s697_s5, 1  ;;  %p180_p4 = scmp.ne.s32.totalorder %s841_s24, %s837_s23 }
   0xb   : > { %s929_s7 = scalar_select %p26_p1, %s845_s25, %s28_s29  }
   0xc   : > { %p931_p5 = por %p36_p2, %p35_p0  ;;  %p935_p6 = por %p175_p3, %p35_p0 }
   0xd   : > { %p181_p7 = scmp.eq.s32.totalorder %s698_s27, 1  ;;  %p700_p9 = scmp.ge.s32.totalorder %s849_s26, 2 }
   0xf   : > { %p939_p8 = por %p181_p7, %p180_p4  ;;  %209 = sbr.rel (%p700_p9) target bundleno = 38 (0x26), region = 32 }
  0x16   : > { %212 = sbr.rel (!%p931_p5) target bundleno = 30 (0x1e), region = 36  ;;  %s214_s11 = sand.u32 (%p931_p5), 1, %s845_s25  }
  0x17   : > { %s720_s12 = sshll.u32 (%p931_p5), %s849_s26, 4  ;;  %s701_s13 = sshll.u32 (%p931_p5), %s214_s11, 6 }
  0x18   : > { %s219_s16 = scalar_lea.vmem (%p931_p5), %s1056_s0, %s720_s12  ;;  %s216_s17 = scalar_lea.vmem (%p931_p5), [#allocation3], %s701_s13 }
  0x19   : > { %v232_v1 = vld [vmem:[%s219_s16] sm:$0xff] (%p931_p5)  ;;  %v234_v2 = vld [vmem:[%s219_s16 + $0x8] sm:$0xff] (%p931_p5) }
  0x1a   : > { %v236_v3 = vld [vmem:[%s219_s16 + $0x20] sm:$0xff] (%p931_p5)  ;;  %233 = vst [vmem:[%s216_s17] sm:$0xff] (%p931_p5), %v232_v1  ;;  %235 = vst [vmem:[%s216_s17 + $0x8] sm:$0xff] (%p931_p5), %v234_v2  ;;  %v238_v4 = vld [vmem:[%s219_s16 + $0x28] sm:$0xff] (%p931_p5) }
  0x1b   : > { %237 = vst [vmem:[%s216_s17 + $0x10] sm:$0xff] (%p931_p5), %v236_v3  ;;  %v240_v5 = vld [vmem:[%s219_s16 + $0x40] sm:$0xff] (%p931_p5)  ;;  %v242_v6 = vld [vmem:[%s219_s16 + $0x48] sm:$0xff] (%p931_p5)  ;;  %239 = vst [vmem:[%s216_s17 + $0x18] sm:$0xff] (%p931_p5), %v238_v4 }
  0x1c   : > { %241 = vst [vmem:[%s216_s17 + $0x20] sm:$0xff] (%p931_p5), %v240_v5  ;;  %243 = vst [vmem:[%s216_s17 + $0x28] sm:$0xff] (%p931_p5), %v242_v6  ;;  %v244_v7 = vld [vmem:[%s219_s16 + $0x60] sm:$0xff] (%p931_p5)  ;;  %v246_v8 = vld [vmem:[%s219_s16 + $0x68] sm:$0xff] (%p931_p5) }
  0x1d   : > { %245 = vst [vmem:[%s216_s17 + $0x30] sm:$0xff] %v244_v7  ;;  %247 = vst [vmem:[%s216_s17 + $0x38] sm:$0xff] %v246_v8 }
  0x1e PF: > { %253 = sbr.rel (!%p931_p5) target bundleno = 38 (0x26), region = 59  ;;  %s255_s18 = sand.u32 (%p931_p5), 1, %s845_s25  }
  0x1f   : > { %s721_s19 = sshll.u32 (%p931_p5), %s849_s26, 4  ;;  %s704_s20 = sshll.u32 (%p931_p5), %s255_s18, 6 }
  0x20   : > { %s260_s27 = scalar_lea.vmem (%p931_p5), %s1057_s1, %s721_s19  ;;  %s257_s29 = scalar_lea.vmem (%p931_p5), [#allocation4], %s704_s20 }
  0x21   : > { %v273_v9 = vld [vmem:[%s260_s27] sm:$0xff] (%p931_p5)  ;;  %v275_v10 = vld [vmem:[%s260_s27 + $0x8] sm:$0xff] (%p931_p5) }
  0x22   : > { %v277_v11 = vld [vmem:[%s260_s27 + $0x20] sm:$0xff] (%p931_p5)  ;;  %274 = vst [vmem:[%s257_s29] sm:$0xff] (%p931_p5), %v273_v9  ;;  %276 = vst [vmem:[%s257_s29 + $0x8] sm:$0xff] (%p931_p5), %v275_v10  ;;  %v279_v12 = vld [vmem:[%s260_s27 + $0x28] sm:$0xff] (%p931_p5) }
  0x23   : > { %278 = vst [vmem:[%s257_s29 + $0x10] sm:$0xff] (%p931_p5), %v277_v11  ;;  %v281_v13 = vld [vmem:[%s260_s27 + $0x40] sm:$0xff] (%p931_p5)  ;;  %v283_v14 = vld [vmem:[%s260_s27 + $0x48] sm:$0xff] (%p931_p5)  ;;  %280 = vst [vmem:[%s257_s29 + $0x18] sm:$0xff] (%p931_p5), %v279_v12 }
  0x24   : > { %282 = vst [vmem:[%s257_s29 + $0x20] sm:$0xff] (%p931_p5), %v281_v13  ;;  %284 = vst [vmem:[%s257_s29 + $0x28] sm:$0xff] (%p931_p5), %v283_v14  ;;  %v285_v15 = vld [vmem:[%s260_s27 + $0x60] sm:$0xff] (%p931_p5)  ;;  %v287_v16 = vld [vmem:[%s260_s27 + $0x68] sm:$0xff] (%p931_p5) }
  0x25   : > { %286 = vst [vmem:[%s257_s29 + $0x30] sm:$0xff] %v285_v15  ;;  %288 = vst [vmem:[%s257_s29 + $0x38] sm:$0xff] %v287_v16 }
  0x26 PF: > { %p707_p10 = scmp.ge.s32.totalorder %s849_s26, 1  ;;  %p293_p11 = scmp.lt.s32.totalorder %s849_s26, 3 }
  0x28   : > { %p294_p12 = pnand %p707_p10, %p293_p11 }
  0x29   : > { %s963_s30 = sand.u32 (!%p294_p12), 1, %s841_s24   ;;  %v851_v17 = vmov (!%p294_p12), 0.0   ;;  %v371_v18 = vld [vmem:[%s1059_s3] sm:$0xff] (!%p294_p12)  ;;  %v852_v19 = vmov (!%p294_p12), 0   ;;  %v372_v20 = vld [vmem:[%s1059_s3 + $0x8] sm:$0xff] (!%p294_p12)  ;;  %v373_v21 = vld [vmem:[%s1059_s3 + $0x10] sm:$0xff] (!%p294_p12) }
  0x2a   : > { %297 = sbr.rel (%p294_p12) target bundleno = 349 (0x15d), region = 82  ;;  %s708_s8 = sshll.u32 (!%p294_p12), %s963_s30, 6  ;;  %472 = vmatprep.mubr.f32.mxu0 (!%p294_p12), %v851_v17  ;;  %484 = vmatprep.mubr.f32.mxu1 (!%p294_p12), %v851_v17  ;;  %v374_v22 = vld [vmem:[%s1059_s3 + $0x18] sm:$0xff] (!%p294_p12)  ;;  %v505_v50 = vld [vmem:[%s1060_s4] sm:$0xff] (!%p294_p12)  ;;  %v506_v51 = vld [vmem:[%s1060_s4 + $0x8] sm:$0xff] (!%p294_p12)  ;;  %vm395_vm0 = vcmask (!%p294_p12), 261120  }
  0x2b   : > { %777 = vset.pattern.permute.xlu0 (!%p294_p12), %v852_v19  ;;  %778 = vset.pattern.permute.xlu1 (!%p294_p12), %v852_v19  ;;  %s302_s19 = scalar_lea.vmem (!%p294_p12), [#allocation3], %s708_s8  ;;  %s309_s20 = scalar_lea.vmem (!%p294_p12), [#allocation4], %s708_s8  ;;  %v507_v53 = vld [vmem:[%s1060_s4 + $0x10] sm:$0xff] (!%p294_p12)  ;;  %v508_v54 = vld [vmem:[%s1060_s4 + $0x18] sm:$0xff] (!%p294_p12)  ;;  %v367_v55 = vld [vmem:[%s1058_s2] sm:$0xff] (!%p294_p12) }
  0x2c   : > { %v344_v23 = vld [vmem:[%s302_s19 + $0x8] sm:$0xff] (!%p294_p12)  ;;  %v346_v24 = vld [vmem:[%s302_s19 + $0x18] sm:$0xff] (!%p294_p12)  ;;  %377 = vperm.xlu0 (!%p294_p12), %777, %v371_v18   ;;  %387 = vperm.xlu1 (!%p294_p12), %778, %v373_v21   ;;  %v343_v28 = vld [vmem:[%s302_s19] sm:$0xff] (!%p294_p12)  ;;  %s710_s22 = sshll.u32 (!%p294_p12), %s963_s30, 1  ;;  %s722_s27 = sshll.u32 (!%p294_p12), %s697_s5, 5 }
  0x2d   : > { %v352_v25 = vld [vmem:[%s309_s20 + $0x8] sm:$0xff] (!%p294_p12)  ;;  %v354_v26 = vld [vmem:[%s309_s20 + $0x18] sm:$0xff] (!%p294_p12)  ;;  %v345_v29 = vld [vmem:[%s302_s19 + $0x10] sm:$0xff] (!%p294_p12)  ;;  %s339_s29 = scalar_lea.vmem (!%p294_p12), [#allocation5], %s710_s22  ;;  %s1012_s13 = scalar_lea.hbm (!%p294_p12), %s1062_s6, %s722_s27 }
  0x2e   : > { %v360_v27 = vmul.f32 (!%p294_p12), %v352_v25, %v344_v23  ;;  %v362_v30 = vmul.f32 (!%p294_p12), %v354_v26, %v346_v24  ;;  %v351_v31 = vld [vmem:[%s309_s20] sm:$0xff] (!%p294_p12)  ;;  %v353_v32 = vld [vmem:[%s309_s20 + $0x10] sm:$0xff] (!%p294_p12)  ;;  %v348_v33 = vld [vmem:[%s302_s19 + $0x28] sm:$0xff] (!%p294_p12)  ;;  %s615_s8 = sshll.u32 (!%p294_p12), %s339_s29, 4  ;;  %s601_s14 = scalar_lea.sflag (!%p294_p12), [#allocation6], %s963_s30  ;;  %s1014_s8 = int_to_ptr.vmem [resolvable:$true] %s615_s8 }
  0x2f   : > { %v359_v34 = vmul.f32 (!%p294_p12), %v351_v31, %v343_v28  ;;  %v361_v35 = vmul.f32 (!%p294_p12), %v353_v32, %v345_v29  ;;  %v350_v36 = vld [vmem:[%s302_s19 + $0x38] sm:$0xff] (!%p294_p12)  ;;  %v356_v37 = vld [vmem:[%s309_s20 + $0x28] sm:$0xff] (!%p294_p12)  ;;  %v347_v42 = vld [vmem:[%s302_s19 + $0x20] sm:$0xff] (!%p294_p12)  ;;  %s787_s15 = scalar_lea.vmem (!%p294_p12), %s1014_s8, 32  ;;  %s854_s5 = smov (!%p294_p12), [#allocation5]  }
  0x30   : > { %v358_v38 = vld [vmem:[%s309_s20 + $0x38] sm:$0xff] (!%p294_p12)  ;;  %v723_v39 = vpack.c.bf16 (!%p294_p12), %v362_v30, %v360_v27  ;;  %v364_v40 = vmul.f32 (!%p294_p12), %v356_v37, %v348_v33  ;;  %v349_v43 = vld [vmem:[%s302_s19 + $0x30] sm:$0xff] (!%p294_p12)  ;;  %v355_v44 = vld [vmem:[%s309_s20 + $0x20] sm:$0xff] (!%p294_p12)  ;;  %382 = vperm.xlu0 (!%p294_p12), %777, %v372_v20   ;;  %392 = vperm.xlu1 (!%p294_p12), %778, %v374_v22   ;;  %p788_p13 = scmp.ne.s32.totalorder (!%p294_p12), %s1014_s8, %s787_s15  ;;  %s791_s16 = sshll.u32 (!%p294_p12), %s854_s5, 4  ;;  %s792_s16 = int_to_ptr.vmem [resolvable:$false] %s791_s16 }
  0x31   : > { %v366_v41 = vmul.f32 %v358_v38, %v350_v36  ;;  %v725_v45 = vpack.c.bf16 %v361_v35, %v359_v34  ;;  %v357_v46 = vld [vmem:[%s309_s20 + $0x30] sm:$0xff]  ;;  %v363_v47 = vmul.f32 %v355_v44, %v347_v42  ;;  %v555_v57 = vld [vmem:[#allocation2] sm:$0x1]  ;;  %v368_v58 = vld [vmem:[%s1058_s2 + $0x8] sm:$0xff]  ;;  %s793_s17 = scalar_lea.vmem %s792_s16, 64  ;;  %p794_p2 = scmp.lt.s32.totalorder %s1014_s8, %s792_s16 }
  0x32   : > { %724 = vmatprep.subr.bf16.mxu0 %v723_v39  ;;  %731 = vmatprep.subr.bf16.mxu1 %v723_v39  ;;  %v365_v49 = vmul.f32 %v357_v46, %v349_v43  ;;  %v369_v56 = vld [vmem:[%s1058_s2 + $0x10] sm:$0xff]  ;;  %v370_v59 = vld [vmem:[%s1058_s2 + $0x18] sm:$0xff]  ;;  %p789_p0 = pnand %p788_p13, %p935_p6  ;;  %p795_p3 = scmp.lt.s32.totalorder %s793_s17, %s787_s15 }
  0x33   : > { %v727_v48 = vpack.c.bf16 %v366_v41, %v364_v40  ;;  %726 = vmatpush1.bf16.msra.mxu0 %v725_v45  ;;  %733 = vmatpush1.bf16.msra.mxu1 %v725_v45  ;;  %v561_v40 = vlaneseq }
  0x34   : > { %v729_v52 = vpack.c.bf16 %v365_v49, %v363_v47  ;;  %511 = vperm.xlu0 %777, %v505_v50   ;;  %516 = vperm.xlu1 %778, %v506_v51   ;;  %p790_p1 = pneg %p789_p0  ;;  %p796_p4 = por %p795_p3, %p794_p2 }
  0x35   : > { %728 = vmatprep.subr.bf16.mxu0 %v727_v48  ;;  %732 = vmatprep.subr.bf16.mxu1 %v727_v48  ;;  %v562_v45 = vshrl.u32 %v561_v40, 7  ;;  %vm597_vm1 = vcmp.lt.s32.totalorder %v561_v40, 256 }
  0x36   : > { %p797_p5 = pnand %p796_p4, %p790_p1 }
  0x37   : > { %730 = vmatpush1.bf16.msra.mxu0 %v729_v52  ;;  %734 = vmatpush1.bf16.msra.mxu1 %v729_v52  ;;  %v563_v50 = vsub.s32 0, %v562_v45 }
  0x38   : > { %521 = vperm.xlu0 %777, %v507_v53   ;;  %526 = vperm.xlu1 %778, %v508_v54  }
  0x3a   : > { %711 = vmatmul.mubr.msk.f32.vlgmr.msra.gmra.mrb[0].mxu0 %vm395_vm0, %v367_v55  ;;  %713 = vmatmul.mubr.msk.f32.vlgmr.msra.gmra.mrb[0].mxu1 %vm395_vm0, %v369_v56 }
  0x3b   : > { %478 = vmatprep.mubr.f32.mxu0 %v851_v17  ;;  %490 = vmatprep.mubr.f32.mxu1 %v851_v17 }
  0x3c   : > { %558 = vperm.xlu0 %777, %v555_v57  }
  0x3e   : > { %712 = vmatmul.mubr.msk.f32.gmra.mrb[2].mxu0 %vm395_vm0, %v368_v58  ;;  %714 = vmatmul.mubr.msk.f32.gmra.mrb[2].mxu1 %vm395_vm0, %v370_v59 }
  0xab   : > { %v378_v60 = vpop.permute.xlu0 %377  ;;  %v388_v61 = vpop.permute.xlu1 %387 }
  0xaf   : > { %v383_v62 = vpop.permute.xlu0 %382  ;;  %v393_v63 = vpop.permute.xlu1 %392 }
  0xb3   : > { %v512_v6 = vpop.permute.xlu0 %511  ;;  %v517_v16 = vpop.permute.xlu1 %516 }
  0xb7   : > { %v522_v27 = vpop.permute.xlu0 %521  ;;  %v527_v33 = vpop.permute.xlu1 %526 }
  0xbb   : > { %v559_v52 = vpop.permute.xlu0 %558 }
  0xbc   : > { %v564_v56 = vrot.slane %v559_v52, %v563_v50 }
 0x10d   : > { %v474_v0 = vpop.f32.mrb[0].mxu0  ;;  %v486_v1 = vpop.f32.mrb[0].mxu1 }
 0x10e   : > { %v475_v2 = vadd.f32 %v474_v0, %v378_v60  ;;  %v476_v3 = vpop.f32.mrb[1].mxu0  ;;  %v488_v4 = vpop.f32.mrb[1].mxu1  ;;  %v487_v7 = vadd.f32 %v486_v1, %v388_v61 }
 0x10f   : > { %v477_v5 = vadd.f32 %v476_v3, %v378_v60  ;;  %v489_v8 = vadd.f32 %v488_v4, %v388_v61 }
 0x110   : > { %v497_v11 = vmax.f32 %v475_v2, 0.0  ;;  %v501_v20 = vmax.f32 %v487_v7, 0.0 }
 0x111   : > { %v480_v9 = vpop.f32.mrb[2].mxu0  ;;  %v492_v10 = vpop.f32.mrb[2].mxu1  ;;  %v498_v17 = vmax.f32 %v477_v5, 0.0  ;;  %v502_v22 = vmax.f32 %v489_v8, 0.0  ;;  %v853_v5 = vmov 1966171168  }
 0x112   : > { %v481_v12 = vadd.f32 %v480_v9, %v383_v62  ;;  %v493_v13 = vadd.f32 %v492_v10, %v393_v63  ;;  %v482_v14 = vpop.f32.mrb[3].mxu0  ;;  %v494_v15 = vpop.f32.mrb[3].mxu1  ;;  %v529_v24 = vmul.f32 %v512_v6, %v497_v11  ;;  %v533_v31 = vmul.f32 %v522_v27, %v501_v20 }
 0x113   : > { %v483_v18 = vadd.f32 %v482_v14, %v383_v62  ;;  %v495_v19 = vadd.f32 %v494_v15, %v393_v63  ;;  %v530_v28 = vmul.f32 %v512_v6, %v498_v17  ;;  %v534_v34 = vmul.f32 %v522_v27, %v502_v22 }
 0x114   : > { %v499_v21 = vmax.f32 %v481_v12, 0.0  ;;  %v503_v26 = vmax.f32 %v493_v13, 0.0  ;;  %v581_v6 = vunpack.c.l.s4 %v853_v5 }
 0x115   : > { %v500_v23 = vmax.f32 %v483_v18, 0.0  ;;  %v504_v30 = vmax.f32 %v495_v19, 0.0 }
 0x116   : > { %v531_v25 = vmul.f32 %v517_v16, %v499_v21  ;;  %v535_v36 = vmul.f32 %v527_v33, %v503_v26  ;;  %v582_v7 = vunpack.c.0.s8 %v581_v6 }
 0x117   : > { %v532_v29 = vmul.f32 %v517_v16, %v500_v23  ;;  %v536_v38 = vmul.f32 %v527_v33, %v504_v30 }
 0x118   : > { %v537_v32 = vadd.f32 %v531_v25, %v529_v24  ;;  %v585_v9 = vsub.s32 %v582_v7, %v562_v45 }
 0x119   : > { %v546_v35 = vadd.f32 %v532_v29, %v530_v28 }
 0x11a   : > { %v538_v37 = vadd.f32 %v537_v32, %v533_v31 }
 0x11b   : > { %v547_v39 = vadd.f32 %v546_v35, %v534_v34 }
 0x11c   : > { %v539_v41 = vadd.f32 %v538_v37, %v535_v36 }
 0x11d   : > { %v548_v42 = vadd.f32 %v547_v39, %v536_v38 }
 0x11e   : > { %v540_v43 = vrot.slane %v539_v41, 4 }
 0x11f   : > { %v549_v44 = vrot.slane %v548_v42, 4 }
 0x120   : > { %v541_v46 = vadd.f32 %v540_v43, %v539_v41 }
 0x121   : > { %v550_v47 = vadd.f32 %v549_v44, %v548_v42 }
 0x122   : > { %v542_v48 = vrot.slane %v541_v46, 2 }
 0x123   : > { %v551_v49 = vrot.slane %v550_v47, 2 }
 0x124   : > { %v543_v51 = vadd.f32 %v542_v48, %v541_v46 }
 0x125   : > { %v552_v53 = vadd.f32 %v551_v49, %v550_v47 }
 0x126   : > { %v544_v54 = vrot.slane %v543_v51, 1 }
 0x127   : > { %v553_v55 = vrot.slane %v552_v53, 1 }
 0x128   : > { %v545_v57 = vadd.f32 %v544_v54, %v543_v51 }
 0x129   : > { %v554_v58 = vadd.f32 %v553_v55, %v552_v53 }
 0x12a   : > { %v565_v59 = vadd.f32 %v564_v56, %v545_v57 }
 0x12b   : > { %v566_v60 = vadd.f32 %v564_v56, %v554_v58 }
 0x12c   : > { %v567_v61 = vsub.f32 0.0, %v565_v59 }
 0x12d   : > { %v568_v62 = vsub.f32 0.0, %v566_v60 }
 0x12e   : > { %v569_v63 = vmul.f32 1.442695, %v567_v61 }
 0x12f   : > { %v571_v0 = vmul.f32 1.442695, %v568_v62 }
 0x130   : > { %779 = vpow2.f32 %v569_v63 }
 0x131   : > { %781 = vpow2.f32 %v571_v0 }
 0x13a   : > { %v780_v1 = vpop.eup %779 }
 0x13b   : > { %v782_v2 = vpop.eup %781  ;;  %v573_v3 = vadd.f32 1.0, %v780_v1 }
 0x13c   : > { %v574_v4 = vadd.f32 1.0, %v782_v2 }
 0x13d   : > { %783 = vrcp.f32 %v573_v3 }
 0x13e   : > { %785 = vrcp.f32 %v574_v4 }
 0x147   : > { %v784_v8 = vpop.eup %783 }
 0x148   : > { %v786_v10 = vpop.eup %785 }
 0x149   : > { %v579_v11 = vcombine.low %v784_v8, %v786_v10 }
 0x14b   : > { %v586_v12 = vrot.slane %v579_v11, %v585_v9 }
 0x14d   : > { %v593_v13 = vrot.slane %v586_v12, %v585_v9 }
 0x14f   : > { %599 = vst.msk [vmem:[%s339_s29] sm:$0x3] %vm597_vm1, %v593_v13 }
 0x150   : > { %800 = shalt.err (!%p797_p5)
}
 0x151   : > { %s801_s30 = scalar_lea.hbm %s1012_s13, 32  ;;  %s805_s20 = scalar_lea.hbm %s1062_s6, 64 }
 0x152   : > { %p802_p7 = scmp.ne.s32.totalorder %s1012_s13, %s801_s30  ;;  %p806_p12 = scmp.lt.u32.totalorder %s1012_s13, %s1062_s6 }
 0x153   : > { %p807_p13 = scmp.lt.u32.totalorder %s805_s20, %s801_s30  ;;  %p809_p1 = scmp.lt.u32.totalorder %s801_s30, %s1012_s13 }
 0x154   : > { %p803_p10 = pnand %p802_p7, %p935_p6 }
 0x155   : > { %p808_p0 = por %p807_p13, %p806_p12 }
 0x156   : > { %p804_p11 = pneg %p803_p10 }
 0x157   : > { %p810_p2 = por %p809_p1, %p808_p0 }
 0x159   : > { %p811_p3 = pnand %p810_p2, %p804_p11 }
 0x15b   : > { %814 = shalt.err (!%p811_p3)
}
 0x15c   : > { %735 = dma.vmem_to_hbm [thread:$0]  (%p935_p6), %s1014_s8, 32, %s1012_s13, %s601_s14  }
 0x15d PF: > { %s627_s27 = sand.u32 1, %s837_s23   ;;  %p738_p4 = pnand %p700_p9, %p939_p8 }
 0x15e   : > { %s628_s29 = scalar_lea.sflag [#allocation6], %s627_s27 }
 0x15f   : > { %832 = dma.done.wait (!%p738_p4), %s628_s29, 32  }
 0x160   : > { %834 = vsyncadd (!%p738_p4), %s628_s29, 4294967264  ;;  %p18_p5 = scmp.ge.s32.totalorder %s916_s28, 4   ;;  %s1066_s23 = smov %s841_s24 }
 0x161   : > { %s1067_s24 = smov %s845_s25  ;;  %s1068_s25 = smov %s929_s7 }
 0x162   : > { %s1069_s26 = smov %s916_s28  ;;  %20 = sbr.rel (!%p18_p5) target bundleno = 6 (0x6), region = 138 }
 0x169   :  { %633 = vsyncpa [#allocation6], 1 }
 0x16a   :  { %635 = vsyncpa [#allocation6 + $0x1], 1 }

</bundles_post_ra>
